<compile_context>
chip_gen: v6e
topology: v6e:2x2x1
jax: 0.10.0
libtpu: 0.0.40
codegen_flags: <defaults>
</compile_context>

<pallas_src>
import jax
import jax.numpy as jnp
from jax.experimental import pallas as pl
from jax.experimental.pallas import tpu as pltpu


N_MODELS = 5
MAX_TILE_B = 512   # rows per grid step (cap)


def _round_up(x, m):
    return ((x + m - 1) // m) * m


def _choose_tile_b(b):
    """Pick the batch tile size.

    Constraints: the output block is (N_MODELS, tile_b), so tile_b (a lane
    dim) must be a multiple of 128 OR equal to the full batch; the input
    blocks have tile_b as the sublane dim (multiple of 8 OR full batch) —
    the 128 rule subsumes it.

    Policy: for small batches use one full-extent tile (single grid step —
    best on single-core v5e/v6e, negligible loss on v7x at these sizes).
    For larger batches split into >=2 tiles of <=512 rows so v7x can shard
    the "parallel" batch axis across its two TensorCores.
    """
    if b < 256:
        return b
    half = _round_up(-(-b // 2), 128)
    return min(MAX_TILE_B, half)


def _disagreement_kernel(obs_ref, act_ref, nxt_ref,
                         w1o_ref, w1a_ref, b1_ref, w2_ref, b2_ref,
                         out_ref):
    # obs_ref: (TB, obs_dim) bf16       act_ref: (TB, act_dim) bf16
    # nxt_ref: (TB, obs_dim) f32
    # w1o_ref: (obs_dim, M*H) bf16      w1a_ref: (act_dim, M*H) bf16
    # b1_ref : (1, M*H) f32
    # w2_ref : (M*H, M*obs_dim) bf16 (block-diagonal)   b2_ref: (1, M*obs_dim) f32
    # out_ref: (M, TB) f32   (transposed, lane-dense)

    # First layer for all 5 models in one shot: (TB, M*H), f32 accumulation.
    h = (jnp.dot(obs_ref[...], w1o_ref[...], preferred_element_type=jnp.float32)
         + jnp.dot(act_ref[...], w1a_ref[...], preferred_element_type=jnp.float32)
         + b1_ref[...])
    h = jnp.maximum(h, 0.0)                                   # ReLU (f32, VPU)

    # Second layer (no bias): block-diagonal weights -> all 5 predictions.
    pred = jnp.dot(h.astype(jnp.bfloat16), w2_ref[...],
                   preferred_element_type=jnp.float32)        # (TB, M*obs_dim)

    nxt = nxt_ref[...]                                        # (TB, obs_dim) f32
    obs_dim = nxt.shape[-1]

    # Fold b2 into the target and do the diff/square once at full lane width.
    target = jnp.concatenate([nxt] * N_MODELS, axis=-1) - b2_ref[...]
    diff = target - pred
    sq = diff * diff                                          # (TB, M*obs_dim) f32

    # Per-model squared-error reduction over each model's lane block; results
    # are stacked along sublanes and stored as one lane-dense (M, TB) block.
    rows = []
    for m in range(N_MODELS):                                 # static unroll
        rows.append(jnp.sum(sq[:, m * obs_dim:(m + 1) * obs_dim], axis=-1))
    out_ref[...] = jnp.sqrt(jnp.stack(rows, axis=0)).astype(out_ref.dtype)


def fuse_params(params, obs_dim):
    """Fuse per-model weights into MXU-friendly stacked / block-diagonal mats."""
    w1, b1, w2, b2 = params                  # (M,in,H), (M,1,H), (M,H,O), (M,1,O)
    m, in_dim, h = w1.shape
    o = w2.shape[-1]
    # First layer: split obs/action rows, stack models along the output axis.
    w1o = jnp.transpose(w1[:, :obs_dim, :], (1, 0, 2)).reshape(obs_dim, m * h)
    w1a = jnp.transpose(w1[:, obs_dim:, :], (1, 0, 2)).reshape(in_dim - obs_dim, m * h)
    b1f = b1.reshape(1, m * h)
    # Second layer: block-diagonal so a single dot evaluates all models.
    # (Zero padding is deliberately accepted — see header comment.)
    w2bd = jnp.zeros((m * h, m * o), w2.dtype)
    for i in range(m):
        w2bd = w2bd.at[i * h:(i + 1) * h, i * o:(i + 1) * o].set(w2[i])
    b2f = b2.reshape(1, m * o)
    # Weights in bf16 for the MXU (halves weight DMA bytes); biases stay f32.
    return (w1o.astype(jnp.bfloat16), w1a.astype(jnp.bfloat16), b1f,
            w2bd.astype(jnp.bfloat16), b2f)


def disagreement_forward(obs, action, next_obs, fused_params):
    """Pallas equivalent of Disagreement.forward -> (B, n_models)."""
    w1o, w1a, b1f, w2bd, b2f = fused_params
    b, obs_dim = obs.shape
    act_dim = action.shape[-1]
    mh = w1o.shape[-1]
    mo = w2bd.shape[-1]

    tile_b = _choose_tile_b(b)
    grid = (pl.cdiv(b, tile_b),)

    # obs/action are pure MXU LHS operands: pre-cast to bf16 to halve their
    # DMA traffic (numerically identical to the previous in-kernel cast).
    obs_bf = obs.astype(jnp.bfloat16)
    act_bf = action.astype(jnp.bfloat16)

    out_t = pl.pallas_call(
        _disagreement_kernel,
        out_shape=jax.ShapeDtypeStruct((N_MODELS, b), jnp.float32),
        grid=grid,
        in_specs=[
            # Activations: tiled over the batch grid.
            pl.BlockSpec((tile_b, obs_dim), lambda i: (i, 0)),
            pl.BlockSpec((tile_b, act_dim), lambda i: (i, 0)),
            pl.BlockSpec((tile_b, obs_dim), lambda i: (i, 0)),
            # Weights: constant index_map -> DMA'd once, VMEM-resident.
            pl.BlockSpec((obs_dim, mh), lambda i: (0, 0)),
            pl.BlockSpec((act_dim, mh), lambda i: (0, 0)),
            pl.BlockSpec((1, mh), lambda i: (0, 0)),
            pl.BlockSpec((w2bd.shape[0], mo), lambda i: (0, 0)),
            pl.BlockSpec((1, mo), lambda i: (0, 0)),
        ],
        # Transposed (M, B) output so the kernel store is lane-dense.
        out_specs=pl.BlockSpec((N_MODELS, tile_b), lambda i: (0, i)),
        compiler_params=pltpu.CompilerParams(
            dimension_semantics=("parallel",)),
    )(obs_bf, act_bf, next_obs, w1o, w1a, b1f, w2bd, b2f)

    # Consumers that accept (n_models, B) can skip this transpose.
    # TODO(synk): optionally fuse the get_disagreement variance reduction into
    # the kernel epilogue (the (5, TB) block is already live in vregs).
    return out_t.T                                             # (B, n_models)


def init_params(key, obs_dim, action_dim, hidden_dim, n_models=N_MODELS):
    """Deterministic synthetic parameters (stacked over the ensemble axis)."""
    in_dim = obs_dim + action_dim
    k1, k2, k3, k4 = jax.random.split(key, 4)
    s1 = 1.0 / jnp.sqrt(in_dim)
    s2 = 1.0 / jnp.sqrt(hidden_dim)
    w1 = jax.random.uniform(k1, (n_models, in_dim, hidden_dim), jnp.float32, -s1, s1)
    b1 = jax.random.uniform(k2, (n_models, 1, hidden_dim), jnp.float32, -s1, s1)
    w2 = jax.random.uniform(k3, (n_models, hidden_dim, obs_dim), jnp.float32, -s2, s2)
    b2 = jax.random.uniform(k4, (n_models, 1, obs_dim), jnp.float32, -s2, s2)
    return w1, b1, w2, b2


def disagreement_forward_ref(obs, action, next_obs, params):
    """Plain-JAX f32 reference (matches the PyTorch module)."""
    w1, b1, w2, b2 = params
    x = jnp.concatenate([obs, action], axis=-1)
    errs = []
    for m in range(N_MODELS):
        h = jnp.maximum(x @ w1[m] + b1[m], 0.0)
        pred = h @ w2[m] + b2[m]
        errs.append(jnp.linalg.norm(next_obs - pred, axis=-1, keepdims=True))
    return jnp.concatenate(errs, axis=-1)


if __name__ == "__main__":
    obs_dim, action_dim, hidden_dim = 32, 16, 64
    batch = 256   # -> 2 batch tiles of 128 rows (grid >= 2 for v7x's 2 TCs)

    key = jax.random.PRNGKey(0)
    kp, ko, ka, kn = jax.random.split(key, 4)

    params = init_params(kp, obs_dim, action_dim, hidden_dim)
    fused = fuse_params(params, obs_dim)

    obs = jax.random.normal(ko, (batch, obs_dim), jnp.float32)
    action = jax.random.normal(ka, (batch, action_dim), jnp.float32)
    next_obs = jax.random.normal(kn, (batch, obs_dim), jnp.float32)

    out = disagreement_forward(obs, action, next_obs, fused)
    out = jax.block_until_ready(out)

    ref = disagreement_forward_ref(obs, action, next_obs, params)
    assert out.shape == (batch, N_MODELS)
    # bf16 matmul operands (f32 accumulation) -> relaxed tolerance vs f32 ref.
    assert jnp.allclose(out, ref, atol=2e-2, rtol=2e-2), float(
        jnp.max(jnp.abs(out - ref)))

    print("KERNEL_OK")
</pallas_src>

<mosaic_0001>
module attributes {stable_mosaic.version = 11 : i64} {
  func.func @_disagreement_kernel(%arg0: i32, %arg1: memref<128x32xbf16, #tpu.memory_space<vmem>>, %arg2: memref<128x16xbf16, #tpu.memory_space<vmem>>, %arg3: memref<128x32xf32, #tpu.memory_space<vmem>>, %arg4: memref<32x320xbf16, #tpu.memory_space<vmem>>, %arg5: memref<16x320xbf16, #tpu.memory_space<vmem>>, %arg6: memref<1x320xf32, #tpu.memory_space<vmem>>, %arg7: memref<320x160xbf16, #tpu.memory_space<vmem>>, %arg8: memref<1x160xf32, #tpu.memory_space<vmem>>, %arg9: memref<5x128xf32, #tpu.memory_space<vmem>>) attributes {dimension_semantics = [#tpu.dimension_semantics<parallel>], iteration_bounds = array<i64: 2>, scalar_prefetch = 0 : i64, scratch_operands = 0 : i64, tpu.core_type = #tpu.core_type<tc>, window_params = [{transform_indices = @transform_0, window_bounds = array<i64: 128, 32>}, {transform_indices = @transform_1, window_bounds = array<i64: 128, 16>}, {transform_indices = @transform_2, window_bounds = array<i64: 128, 32>}, {pipeline_mode = #tpu.pipeline_mode<synchronous>, transform_indices = @transform_3, window_bounds = array<i64: 32, 320>}, {pipeline_mode = #tpu.pipeline_mode<synchronous>, transform_indices = @transform_4, window_bounds = array<i64: 16, 320>}, {pipeline_mode = #tpu.pipeline_mode<synchronous>, transform_indices = @transform_5, window_bounds = array<i64: 1, 320>}, {pipeline_mode = #tpu.pipeline_mode<synchronous>, transform_indices = @transform_6, window_bounds = array<i64: 320, 160>}, {pipeline_mode = #tpu.pipeline_mode<synchronous>, transform_indices = @transform_7, window_bounds = array<i64: 1, 160>}, {transform_indices = @transform_8, window_bounds = array<i64: 5, 128>}]} {
    %c0 = arith.constant 0 : index
    %c0_0 = arith.constant 0 : index
    %0 = vector.load %arg1[%c0, %c0_0] : memref<128x32xbf16, #tpu.memory_space<vmem>>, vector<128x32xbf16>
    %c0_1 = arith.constant 0 : index
    %c0_2 = arith.constant 0 : index
    %1 = vector.load %arg4[%c0_1, %c0_2] : memref<32x320xbf16, #tpu.memory_space<vmem>>, vector<32x320xbf16>
    %cst = arith.constant dense<0.000000e+00> : vector<128x320xf32>
    %2 = tpu.matmul %0, %1, %cst {dimension_numbers = #tpu.dot_dimension_numbers<[1], [0], [0], [1], [0, 0, 1, 1], [], []>} : vector<128x32xbf16>, vector<32x320xbf16>, vector<128x320xf32> -> vector<128x320xf32>
    %c0_3 = arith.constant 0 : index
    %c0_4 = arith.constant 0 : index
    %3 = vector.load %arg2[%c0_3, %c0_4] : memref<128x16xbf16, #tpu.memory_space<vmem>>, vector<128x16xbf16>
    %c0_5 = arith.constant 0 : index
    %c0_6 = arith.constant 0 : index
    %4 = vector.load %arg5[%c0_5, %c0_6] : memref<16x320xbf16, #tpu.memory_space<vmem>>, vector<16x320xbf16>
    %cst_7 = arith.constant dense<0.000000e+00> : vector<128x320xf32>
    %5 = tpu.matmul %3, %4, %cst_7 {dimension_numbers = #tpu.dot_dimension_numbers<[1], [0], [0], [1], [0, 0, 1, 1], [], []>} : vector<128x16xbf16>, vector<16x320xbf16>, vector<128x320xf32> -> vector<128x320xf32>
    %6 = arith.addf %2, %5 : vector<128x320xf32>
    %c0_8 = arith.constant 0 : index
    %c0_9 = arith.constant 0 : index
    %7 = vector.load %arg6[%c0_8, %c0_9] : memref<1x320xf32, #tpu.memory_space<vmem>>, vector<1x320xf32>
    %8 = vector.broadcast %7 : vector<1x320xf32> to vector<128x320xf32>
    %9 = arith.addf %6, %8 : vector<128x320xf32>
    %cst_10 = arith.constant 0.000000e+00 : f32
    %10 = vector.broadcast %cst_10 : f32 to vector<128x320xf32>
    %11 = arith.maximumf %9, %10 : vector<128x320xf32>
    %12 = arith.truncf %11 : vector<128x320xf32> to vector<128x320xbf16>
    %c0_11 = arith.constant 0 : index
    %c0_12 = arith.constant 0 : index
    %13 = vector.load %arg7[%c0_11, %c0_12] : memref<320x160xbf16, #tpu.memory_space<vmem>>, vector<320x160xbf16>
    %cst_13 = arith.constant dense<0.000000e+00> : vector<128x160xf32>
    %14 = tpu.matmul %12, %13, %cst_13 {dimension_numbers = #tpu.dot_dimension_numbers<[1], [0], [0], [1], [0, 0, 1, 1], [], []>} : vector<128x320xbf16>, vector<320x160xbf16>, vector<128x160xf32> -> vector<128x160xf32>
    %c0_14 = arith.constant 0 : index
    %c0_15 = arith.constant 0 : index
    %15 = vector.load %arg3[%c0_14, %c0_15] : memref<128x32xf32, #tpu.memory_space<vmem>>, vector<128x32xf32>
    %16 = tpu.concatenate %15, %15, %15, %15, %15 in 1 : vector<128x32xf32>, vector<128x32xf32>, vector<128x32xf32>, vector<128x32xf32>, vector<128x32xf32> -> vector<128x160xf32>
    %c0_16 = arith.constant 0 : index
    %c0_17 = arith.constant 0 : index
    %17 = vector.load %arg8[%c0_16, %c0_17] : memref<1x160xf32, #tpu.memory_space<vmem>>, vector<1x160xf32>
    %18 = vector.broadcast %17 : vector<1x160xf32> to vector<128x160xf32>
    %19 = arith.subf %16, %18 : vector<128x160xf32>
    %20 = arith.subf %19, %14 : vector<128x160xf32>
    %21 = arith.mulf %20, %20 : vector<128x160xf32>
    %22 = vector.extract_strided_slice %21 {offsets = [0, 0], sizes = [128, 32], strides = [1, 1]} : vector<128x160xf32> to vector<128x32xf32>
    %cst_18 = arith.constant dense<0.000000e+00> : vector<128xf32>
    %23 = vector.multi_reduction <add>, %22, %cst_18 [1] : vector<128x32xf32> to vector<128xf32>
    %24 = vector.extract_strided_slice %21 {offsets = [0, 32], sizes = [128, 32], strides = [1, 1]} : vector<128x160xf32> to vector<128x32xf32>
    %cst_19 = arith.constant dense<0.000000e+00> : vector<128xf32>
    %25 = vector.multi_reduction <add>, %24, %cst_19 [1] : vector<128x32xf32> to vector<128xf32>
    %26 = vector.extract_strided_slice %21 {offsets = [0, 64], sizes = [128, 32], strides = [1, 1]} : vector<128x160xf32> to vector<128x32xf32>
    %cst_20 = arith.constant dense<0.000000e+00> : vector<128xf32>
    %27 = vector.multi_reduction <add>, %26, %cst_20 [1] : vector<128x32xf32> to vector<128xf32>
    %28 = vector.extract_strided_slice %21 {offsets = [0, 96], sizes = [128, 32], strides = [1, 1]} : vector<128x160xf32> to vector<128x32xf32>
    %cst_21 = arith.constant dense<0.000000e+00> : vector<128xf32>
    %29 = vector.multi_reduction <add>, %28, %cst_21 [1] : vector<128x32xf32> to vector<128xf32>
    %30 = vector.extract_strided_slice %21 {offsets = [0, 128], sizes = [128, 32], strides = [1, 1]} : vector<128x160xf32> to vector<128x32xf32>
    %cst_22 = arith.constant dense<0.000000e+00> : vector<128xf32>
    %31 = vector.multi_reduction <add>, %30, %cst_22 [1] : vector<128x32xf32> to vector<128xf32>
    %32 = vector.shape_cast %23 : vector<128xf32> to vector<1x128xf32>
    %33 = vector.shape_cast %25 : vector<128xf32> to vector<1x128xf32>
    %34 = vector.shape_cast %27 : vector<128xf32> to vector<1x128xf32>
    %35 = vector.shape_cast %29 : vector<128xf32> to vector<1x128xf32>
    %36 = vector.shape_cast %31 : vector<128xf32> to vector<1x128xf32>
    %37 = tpu.concatenate %32, %33, %34, %35, %36 in 0 : vector<1x128xf32>, vector<1x128xf32>, vector<1x128xf32>, vector<1x128xf32>, vector<1x128xf32> -> vector<5x128xf32>
    %38 = math.sqrt %37 : vector<5x128xf32>
    %c0_23 = arith.constant 0 : index
    %c0_24 = arith.constant 0 : index
    %39 = vector.load %arg9[%c0_23, %c0_24] : memref<5x128xf32, #tpu.memory_space<vmem>>, vector<5x128xf32>
    tpu.vector_store %arg9[%c0_23, %c0_24], %38 {strides = array<i32>} : memref<5x128xf32, #tpu.memory_space<vmem>>, vector<5x128xf32>,
    return
  }
  func.func @transform_0(%arg0: i32) -> (i32, i32) {
    %c0_i32 = arith.constant 0 : i32
    %c0_i32_0 = arith.constant 0 : i32
    return %arg0, %c0_i32 : i32, i32
  }
  func.func @transform_1(%arg0: i32) -> (i32, i32) {
    %c0_i32 = arith.constant 0 : i32
    %c0_i32_0 = arith.constant 0 : i32
    return %arg0, %c0_i32 : i32, i32
  }
  func.func @transform_2(%arg0: i32) -> (i32, i32) {
    %c0_i32 = arith.constant 0 : i32
    %c0_i32_0 = arith.constant 0 : i32
    return %arg0, %c0_i32 : i32, i32
  }
  func.func @transform_3(%arg0: i32) -> (i32, i32) {
    %c0_i32 = arith.constant 0 : i32
    %c0_i32_0 = arith.constant 0 : i32
    %c0_i32_1 = arith.constant 0 : i32
    return %c0_i32, %c0_i32_0 : i32, i32
  }
  func.func @transform_4(%arg0: i32) -> (i32, i32) {
    %c0_i32 = arith.constant 0 : i32
    %c0_i32_0 = arith.constant 0 : i32
    %c0_i32_1 = arith.constant 0 : i32
    return %c0_i32, %c0_i32_0 : i32, i32
  }
  func.func @transform_5(%arg0: i32) -> (i32, i32) {
    %c0_i32 = arith.constant 0 : i32
    %c0_i32_0 = arith.constant 0 : i32
    %c0_i32_1 = arith.constant 0 : i32
    return %c0_i32, %c0_i32_0 : i32, i32
  }
  func.func @transform_6(%arg0: i32) -> (i32, i32) {
    %c0_i32 = arith.constant 0 : i32
    %c0_i32_0 = arith.constant 0 : i32
    %c0_i32_1 = arith.constant 0 : i32
    return %c0_i32, %c0_i32_0 : i32, i32
  }
  func.func @transform_7(%arg0: i32) -> (i32, i32) {
    %c0_i32 = arith.constant 0 : i32
    %c0_i32_0 = arith.constant 0 : i32
    %c0_i32_1 = arith.constant 0 : i32
    return %c0_i32, %c0_i32_0 : i32, i32
  }
  func.func @transform_8(%arg0: i32) -> (i32, i32) {
    %c0_i32 = arith.constant 0 : i32
    %c0_i32_0 = arith.constant 0 : i32
    return %c0_i32, %arg0 : i32, i32
  }
}

</mosaic_0001>

<bundles_post_ra>
// kernel: tpu_custom_call.1
= control target key start
LH: loop header
LB: loop body
LE: loop exit
PB: predicated region body
PF: predicated region fallthrough
CT: control target
= control target key end

     0   :  { %13 = vsyncpa [#allocation3], 0  ;;  %s4994_s0 = inlined_call_operand.vmem [shape: bf16[256,32], index: 0, kind: input, shape index: {}]   ;;  %s4995_s1 = inlined_call_operand.vmem [shape: bf16[256,16], index: 1, kind: input, shape index: {}]   ;;  %s4996_s2 = inlined_call_operand.vmem [shape: f32[256,32], index: 2, kind: input, shape index: {}]   ;;  %s4997_s3 = inlined_call_operand.vmem [shape: bf16[32,320], index: 3, kind: input, shape index: {}]   ;;  %s4998_s4 = inlined_call_operand.vmem [shape: bf16[16,320], index: 4, kind: input, shape index: {}]   ;;  %s4999_s5 = inlined_call_operand.vmem [shape: f32[1,320], index: 5, kind: input, shape index: {}]   ;;  %s5000_s6 = inlined_call_operand.vmem [shape: bf16[320,160], index: 6, kind: input, shape index: {}]   ;;  %s5001_s7 = inlined_call_operand.vmem [shape: f32[1,160], index: 7, kind: input, shape index: {}]   ;;  %s5002_s8 = inlined_call_operand.hbm [shape: f32[5,256], index: 8, kind: output, shape index: {}]  }
   0x1   :  { %15 = vsyncpa [#allocation3 + $0x1], 0  ;;  %s3415_s27 = smov 0   ;;  %s3417_s28 = smov 0  }
   0x2   :  { %s3419_s29 = smov 0   ;;  %s3421_s30 = smov 0  }
   0x3 LB: > { %s3436_s9 = sadd.s32 4294967295, %s3363_s30   ;;  %s2979_s10 = sadd.s32 4294967294, %s3363_s30   ;;  %s3363_s30 = sphi %s3421_s30, %s5092_s30   ;;  %s3359_s29 = sphi %s3419_s29, %s5091_s29   ;;  %s3355_s28 = sphi %s3417_s28, %s5090_s28   ;;  %s3351_s27 = sphi %s3415_s27, %s5089_s27  }
   0x4   : > { %s3440_s11 = sadd.s32 1, %s3363_s30   ;;  %s211_s12 = sadd.s32 1, %s3359_s29 }
   0x5   : > { %s208_s13 = ssub.s32 %s3363_s30, %s3440_s11  ;;  %p221_p0 = scmp.ne.s32.totalorder %s3359_s29, %s3355_s28 }
   0x6   : > { %p209_p1 = scmp.eq.s32.totalorder %s208_s13, 0  ;;  %p222_p2 = scmp.eq.s32.totalorder %s3436_s9, 1 }
   0x7   : > { %p227_p3 = scmp.ne.s32.totalorder %s3355_s28, %s3351_s27  ;;  %p228_p4 = scmp.eq.s32.totalorder %s2979_s10, 1 }
   0x8   : > { %s3451_s14 = scalar_select %p209_p1, %s3359_s29, %s211_s12  }
   0x9   : > { %p3453_p5 = por %p222_p2, %p221_p0  ;;  %p3457_p6 = por %p228_p4, %p227_p3 }
   0xa   : > { %p2982_p7 = scmp.ge.s32.totalorder %s3363_s30, 1  ;;  %p288_p8 = scmp.lt.s32.totalorder %s3363_s30, 3 }
   0xc   : > { %p289_p9 = pnand %p2982_p7, %p288_p8 }
   0xe   : > { %292 = sbr.rel (%p289_p9) target bundleno = 1544 (0x608), region = 52 }
  0x13   : > { %v3199_v0 = vld [vmem:[%s4998_s4 + $0x4] ss:$12 sps:$4 sm:$0xff]   ;;  %s2984_s19 = sshll.u32 %s3436_s9, 4  ;;  %v3201_v1 = vld [vmem:[%s4998_s4] ss:$12 sps:$4 sm:$0xff]   ;;  %v3365_v2 = vmov 0  }
  0x14   : > { %508 = vmatprep.mubr.bf16.mxu0 %v3365_v2  ;;  %490 = vmatprep.subr.bf16.mxu0 %v3199_v0  ;;  %v3202_v3 = vld [vmem:[%s4998_s4 + $0x8] ss:$12 sps:$4 sm:$0xff]   ;;  %v3203_v4 = vld [vmem:[%s4997_s3 + $0x20] ss:$12 sps:$4 sm:$0xff]   ;;  %p333_p10 = scmp.lt.s32.totalorder %s2984_s19, 31  ;;  %vm451_vm0 = vcmask 130048  }
  0x15   : > { %491 = vmatpush1.bf16.msra.mxu0 %v3201_v1  ;;  %3118 = vmatprep.subr.bf16.mxu1 %v3202_v3  ;;  %v3214_v5 = vld [vmem:[%s4997_s3 + $0x1c] ss:$12 sps:$4 sm:$0xff]   ;;  %v3212_v6 = vld [vmem:[%s4997_s3 + $0x18] ss:$12 sps:$4 sm:$0xff]   ;;  %v3215_v12 = vld [vmem:[%s4997_s3] ss:$12 sps:$4 sm:$0xff]  }
  0x16   : > { %3119 = vmatpush3.bf16.msra.mxu1 %v3202_v3  ;;  %3136 = vmatprep.subr.bf16.mxu0 %v3203_v4  ;;  %s5094_s19 = smov (!%p333_p10, %s2984_s19), 31  ;;  %v3218_v7 = vld [vmem:[%s4997_s3 + $0x8] ss:$12 sps:$4 sm:$0xff]   ;;  %v3217_v9 = vld [vmem:[%s4997_s3 + $0x4] ss:$12 sps:$4 sm:$0xff]   ;;  %vm758_vm1 = vcmask 261120  }
  0x17   : > { %795 = vmatprep.subr.bf16.mxu1 %v3214_v5  ;;  %s2985_s12 = sshll.u32 %s5094_s19, 2  ;;  %v3229_v13 = vld [vmem:[%s5000_s6 + $0x74] ss:$8 sps:$4 sm:$0xff]   ;;  %v3227_v20 = vld [vmem:[%s5000_s6 + $0x70] ss:$8 sps:$4 sm:$0xff]   ;;  %s2989_s21 = sshll.u32 %s5094_s19, 3 }
  0x18   : > { %s3486_s18 = scalar_lea.vmem %s4995_s1, %s2985_s12  ;;  %s3514_s22 = scalar_lea.vmem %s4994_s0, %s2985_s12  ;;  %v3232_v21 = vld [vmem:[%s5000_s6 + $0x64] ss:$8 sps:$4 sm:$0xff]   ;;  %v3230_v22 = vld [vmem:[%s5000_s6 + $0x60] ss:$8 sps:$4 sm:$0xff]   ;;  %v3235_v23 = vld [vmem:[%s5000_s6 + $0x54] ss:$8 sps:$4 sm:$0xff]  }
  0x19   : > { %v3204_v8 = vld [vmem:[%s3486_s18] sm:$0xff]   ;;  %v3205_v10 = vld [vmem:[%s3486_s18 + $0x8] sm:$0xff]   ;;  %v3206_v11 = vld [vmem:[%s3486_s18 + $0x10] sm:$0xff]   ;;  %s3366_s26 = smov 32   ;;  %s3367_s13 = smov 64   ;;  %vm1370_vm2 = vcmask 523264  }
  0x1a   : > { %3001 = vmatmul.mubr.msk.bf16.vlgmr.msra.gmra.mxu0 %vm451_vm0, %v3204_v8  ;;  %3120 = vmatprep.mubr.msk.bf16.mxu1 %vm451_vm0, %v3204_v8  ;;  %v3207_v14 = vld [vmem:[%s3486_s18 + $0x18] sm:$0xff]   ;;  %v3208_v15 = vld [vmem:[%s3486_s18 + $0x20] sm:$0xff]   ;;  %v3209_v16 = vld [vmem:[%s3486_s18 + $0x28] sm:$0xff]   ;;  %s3368_s19 = smov 96   ;;  %vm1829_vm3 = vcmask 785408   ;;  %vm2381_vm4 = vcmask 130112  }
  0x1b   : > { %3137 = vmatpush3.bf16.msra.mxu0 %v3203_v4  ;;  %3121 = vmatmul.mubr.msk.bf16.vlgmr.msra.gmra.mxu1 %vm451_vm0, %v3205_v10  ;;  %v3210_v17 = vld [vmem:[%s3486_s18 + $0x30] sm:$0xff]   ;;  %v3211_v18 = vld [vmem:[%s3486_s18 + $0x38] sm:$0xff]   ;;  %v3219_v19 = vld [vmem:[%s3514_s22] sm:$0xff]   ;;  %s3645_s18 = scalar_lea.vmem %s4996_s2, %s2989_s21  ;;  %vm2388_vm5 = vcmask 195712   ;;  %vm2395_vm6 = vcmask 261312   ;;  %vm2409_vm7 = vcmask 392512  }
  0x1c   : > { %518 = vmatprep.mubr.bf16.mxu0 %v3365_v2  ;;  %3124 = vmatprep.mubr.msk.bf16.mxu1 %vm451_vm0, %v3206_v11  ;;  %v3220_v24 = vld [vmem:[%s3514_s22 + $0x8] sm:$0xff]   ;;  %v3233_v25 = vld [vmem:[%s5000_s6 + $0x50] ss:$8 sps:$4 sm:$0xff]   ;;  %v3223_v30 = vld [vmem:[%s3514_s22 + $0x20] sm:$0xff]   ;;  %vm2402_vm8 = vcmask 326912   ;;  %vm2423_vm9 = vcmask 523712  }
  0x1d   : > { %796 = vmatpush1.bf16.msra.mxu1 %v3212_v6  ;;  %3138 = vmatprep.subr.bf16.mxu0 %v3218_v7  ;;  %v3238_v26 = vld [vmem:[%s5000_s6 + $0x44] ss:$8 sps:$4 sm:$0xff]   ;;  %v3236_v27 = vld [vmem:[%s5000_s6 + $0x40] ss:$8 sps:$4 sm:$0xff]   ;;  %v3221_v28 = vld [vmem:[%s3514_s22 + $0x10] sm:$0xff]   ;;  %vm2416_vm10 = vcmask 458112  }
  0x1e   : > { %797 = vmatprep.subr.bf16.mxu1 %v3217_v9  ;;  %v3222_v29 = vld [vmem:[%s3514_s22 + $0x18] sm:$0xff]   ;;  %v3244_v33 = vld [vmem:[%s5000_s6 + $0x24] ss:$8 sps:$4 sm:$0xff]   ;;  %v3242_v34 = vld [vmem:[%s5000_s6 + $0x20] ss:$8 sps:$4 sm:$0xff]   ;;  %vm2430_vm11 = vcmask 589312  }
  0x1f   : > { %3139 = vmatpush3.bf16.msra.mxu0 %v3218_v7  ;;  %v3241_v31 = vld [vmem:[%s5000_s6 + $0x34] ss:$8 sps:$4 sm:$0xff]   ;;  %v3239_v32 = vld [vmem:[%s5000_s6 + $0x30] ss:$8 sps:$4 sm:$0xff]   ;;  %v3224_v35 = vld [vmem:[%s3514_s22 + $0x28] sm:$0xff]   ;;  %vm2437_vm12 = vcmask 654912  }
  0x20   : > { %v3247_v36 = vld [vmem:[%s5000_s6 + $0x14] ss:$8 sps:$4 sm:$0xff]   ;;  %v3245_v37 = vld [vmem:[%s5000_s6 + $0x10] ss:$8 sps:$4 sm:$0xff]   ;;  %v3250_v38 = vld [vmem:[%s5000_s6 + $0x4] ss:$8 sps:$4 sm:$0xff]  }
  0x21   : > { %798 = vmatpush1.bf16.msra.mxu1 %v3215_v12  ;;  %v3248_v39 = vld [vmem:[%s5000_s6] ss:$8 sps:$4 sm:$0xff]   ;;  %v3225_v40 = vld [vmem:[%s3514_s22 + $0x30] sm:$0xff]   ;;  %v3256_v43 = vld [vmem:[%s5000_s6 + $0xe4] ss:$8 sps:$4 sm:$0xff]   ;;  %vm2444_vm13 = vcmask 720512  }
  0x22   : > { %3002 = vmatmul.mubr.msk.bf16.gmra.mxu0 %vm451_vm0, %v3205_v10  ;;  %1395 = vmatprep.subr.bf16.mxu1 %v3229_v13  ;;  %v3253_v41 = vld [vmem:[%s5000_s6 + $0xf4] ss:$8 sps:$4 sm:$0xff]   ;;  %v3251_v42 = vld [vmem:[%s5000_s6 + $0xf0] ss:$8 sps:$4 sm:$0xff]   ;;  %v3254_v45 = vld [vmem:[%s5000_s6 + $0xe0] ss:$8 sps:$4 sm:$0xff]  }
  0x23   : > { %3125 = vmatmul.mubr.msk.bf16.gmra.mxu1 %vm451_vm0, %v3207_v14  ;;  %528 = vmatprep.mubr.bf16.mxu0 %v3365_v2  ;;  %v3226_v44 = vld [vmem:[%s3514_s22 + $0x38] sm:$0xff]   ;;  %v3262_v48 = vld [vmem:[%s5000_s6 + $0xc4] ss:$8 sps:$4 sm:$0xff]   ;;  %v3260_v49 = vld [vmem:[%s5000_s6 + $0xc0] ss:$8 sps:$4 sm:$0xff]   ;;  %vm2451_vm14 = vcmask 786112  }
  0x24   : > { %3128 = vmatprep.mubr.msk.bf16.mxu1 %vm451_vm0, %v3208_v15  ;;  %v3259_v46 = vld [vmem:[%s5000_s6 + $0xd4] ss:$8 sps:$4 sm:$0xff]   ;;  %v3257_v47 = vld [vmem:[%s5000_s6 + $0xd0] ss:$8 sps:$4 sm:$0xff]   ;;  %v3648_v50 = vld [vmem:[%s3645_s18] sm:$0xff]  ;;  %vm2458_vm15 = vcmask 851712  }
  0x25   : > { %1653 = vrot.lane.b32.xlu0 %v3648_v50, %s3366_s26  ;;  %v3265_v51 = vld [vmem:[%s5000_s6 + $0xb4] ss:$8 sps:$4 sm:$0xff]   ;;  %v3263_v52 = vld [vmem:[%s5000_s6 + $0xb0] ss:$8 sps:$4 sm:$0xff]   ;;  %v3662_v54 = vld [vmem:[%s3645_s18 + $0x8] sm:$0xff] }
  0x26   : > { %v3659_v53 = vld [vmem:[%s3645_s18 + $0x10] sm:$0xff]  ;;  %v3268_v55 = vld [vmem:[%s5000_s6 + $0xa4] ss:$8 sps:$4 sm:$0xff]   ;;  %v3266_v56 = vld [vmem:[%s5000_s6 + $0xa0] ss:$8 sps:$4 sm:$0xff]  }
  0x27   : > { %1657 = vrot.lane.b32.xlu1 %v3659_v53, %s3366_s26  ;;  %v3675_v57 = vld [vmem:[%s3645_s18 + $0x18] sm:$0xff]  ;;  %v3678_v58 = vld [vmem:[%s3645_s18 + $0x20] sm:$0xff]  ;;  %v3691_v61 = vld [vmem:[%s3645_s18 + $0x28] sm:$0xff] }
  0x28   : > { %v3271_v59 = vld [vmem:[%s5000_s6 + $0x94] ss:$8 sps:$4 sm:$0xff]   ;;  %v3269_v60 = vld [vmem:[%s5000_s6 + $0x90] ss:$8 sps:$4 sm:$0xff]   ;;  %v3274_v63 = vld [vmem:[%s5000_s6 + $0x84] ss:$8 sps:$4 sm:$0xff]  }
  0x29   : > { %1655 = vrot.lane.b32.xlu0 %v3662_v54, %s3366_s26  ;;  %v3694_v62 = vld [vmem:[%s3645_s18 + $0x30] sm:$0xff]  ;;  %v3272_v0 = vld [vmem:[%s5000_s6 + $0x80] ss:$8 sps:$4 sm:$0xff]   ;;  %v1628_v1 = vld [vmem:[%s3645_s18 + $0x38] sm:$0xff] }
  0x2a   : > { %3003 = vmatmul.mubr.msk.bf16.gmra.mxu0 %vm451_vm0, %v3206_v11  ;;  %v1629_v3 = vld [vmem:[%s3645_s18 + $0x40] sm:$0xff]  ;;  %v1630_v4 = vld [vmem:[%s3645_s18 + $0x48] sm:$0xff]  ;;  %v1631_v5 = vld [vmem:[%s3645_s18 + $0x50] sm:$0xff] }
  0x2b   : > { %3129 = vmatmul.mubr.msk.bf16.gmra.mxu1 %vm451_vm0, %v3209_v16  ;;  %538 = vmatprep.mubr.bf16.mxu0 %v3365_v2  ;;  %v3275_v6 = vld [vmem:[%s5000_s6 + $0x130] ss:$8 sps:$4 sm:$0xff]   ;;  %v3277_v7 = vld [vmem:[%s5000_s6 + $0x134] ss:$8 sps:$4 sm:$0xff]   ;;  %v1633_v9 = vld [vmem:[%s3645_s18 + $0x60] sm:$0xff] }
  0x2c   : > { %3132 = vmatprep.mubr.msk.bf16.mxu1 %vm451_vm0, %v3210_v17  ;;  %1659 = vrot.lane.b32.xlu1 %v3675_v57, %s3366_s26  ;;  %v1632_v8 = vld [vmem:[%s3645_s18 + $0x58] sm:$0xff]  ;;  %v1634_v10 = vld [vmem:[%s3645_s18 + $0x68] sm:$0xff]  ;;  %v3726_v11 = vld [vmem:[%s3645_s18 + $0x70] sm:$0xff] }
  0x2d   : > { %1661 = vrot.lane.b32.xlu0 %v3678_v58, %s3366_s26  ;;  %1516 = vmatprep.subr.bf16.mxu0 %v3277_v7  ;;  %v3278_v12 = vld [vmem:[%s5000_s6 + $0x120] ss:$8 sps:$4 sm:$0xff]   ;;  %v3280_v13 = vld [vmem:[%s5000_s6 + $0x124] ss:$8 sps:$4 sm:$0xff]  }
  0x30   : > { %1663 = vrot.lane.b32.xlu1 %v3691_v61, %s3366_s26 }
  0x31   : > { %1665 = vrot.lane.b32.xlu0 %v3694_v62, %s3366_s26 }
  0x32   : > { %3004 = vmatmul.mubr.msk.bf16.gmra.mxu0 %vm451_vm0, %v3207_v14  ;;  %v1636_v14 = vld [vmem:[%s3645_s18 + $0x78] sm:$0xff] }
  0x33   : > { %3133 = vmatmul.mubr.msk.bf16.gmra.mxu1 %vm451_vm0, %v3211_v18  ;;  %548 = vmatprep.mubr.bf16.mxu0 %v3365_v2 }
  0x34   : > { %815 = vmatprep.mubr.bf16.mxu1 %v3365_v2  ;;  %1667 = vrot.lane.b32.xlu1 %v1628_v1, %s3366_s26 }
  0x35   : > { %1669 = vrot.lane.b32.xlu0 %v1629_v3, %s3366_s26 }
  0x38   : > { %1671 = vrot.lane.b32.xlu1 %v1630_v4, %s3366_s26 }
  0x39   : > { %1673 = vrot.lane.b32.xlu0 %v1631_v5, %s3366_s26 }
  0x3a   : > { %3005 = vmatmul.mubr.msk.bf16.gmra.mxu0 %vm451_vm0, %v3208_v15  ;;  %v3281_v15 = vld [vmem:[%s5000_s6 + $0x110] ss:$8 sps:$4 sm:$0xff]  }
  0x3b   : > { %3031 = vmatmul.mubr.msk.bf16.vlgmr.msra.gmra.mxu1 %vm758_vm1, %v3219_v19  ;;  %558 = vmatprep.mubr.bf16.mxu0 %v3365_v2 }
  0x3c   : > { %825 = vmatprep.mubr.bf16.mxu1 %v3365_v2  ;;  %1396 = vmatpush1.bf16.msra.mxu1 %v3227_v20 }
  0x3d   : > { %1397 = vmatprep.subr.bf16.mxu1 %v3232_v21  ;;  %1675 = vrot.lane.b32.xlu1 %v1632_v8, %s3366_s26 }
  0x3e   : > { %1677 = vrot.lane.b32.xlu0 %v1633_v9, %s3366_s26 }
  0x40   : > { %1398 = vmatpush1.bf16.msra.mxu1 %v3230_v22 }
  0x41   : > { %1399 = vmatprep.subr.bf16.mxu1 %v3235_v23  ;;  %1679 = vrot.lane.b32.xlu1 %v1634_v10, %s3366_s26 }
  0x42   : > { %3006 = vmatmul.mubr.msk.bf16.gmra.mxu0 %vm451_vm0, %v3209_v16  ;;  %1681 = vrot.lane.b32.xlu0 %v3726_v11, %s3366_s26  ;;  %v3283_v16 = vld [vmem:[%s5000_s6 + $0x114] ss:$8 sps:$4 sm:$0xff]  }
  0x43   : > { %3032 = vmatmul.mubr.msk.bf16.gmra.mxu1 %vm758_vm1, %v3220_v24  ;;  %568 = vmatprep.mubr.bf16.mxu0 %v3365_v2 }
  0x44   : > { %835 = vmatprep.mubr.bf16.mxu1 %v3365_v2  ;;  %1400 = vmatpush1.bf16.msra.mxu1 %v3233_v25 }
  0x45   : > { %1401 = vmatprep.subr.bf16.mxu1 %v3238_v26  ;;  %1683 = vrot.lane.b32.xlu1 %v1636_v14, %s3366_s26 }
  0x46   : > { %1701 = vrot.lane.b32.xlu0 %v3648_v50, %s3367_s13 }
  0x48   : > { %1402 = vmatpush1.bf16.msra.mxu1 %v3236_v27 }
  0x49   : > { %1403 = vmatprep.subr.bf16.mxu1 %v3241_v31  ;;  %1703 = vrot.lane.b32.xlu1 %v3662_v54, %s3367_s13 }
  0x4a   : > { %3007 = vmatmul.mubr.msk.bf16.gmra.mxu0 %vm451_vm0, %v3210_v17  ;;  %1705 = vrot.lane.b32.xlu0 %v3659_v53, %s3367_s13  ;;  %v3286_v17 = vld [vmem:[%s5000_s6 + $0x104] ss:$8 sps:$4 sm:$0xff]  }
  0x4b   : > { %3033 = vmatmul.mubr.msk.bf16.gmra.mxu1 %vm758_vm1, %v3221_v28  ;;  %578 = vmatprep.mubr.bf16.mxu0 %v3365_v2 }
  0x4c   : > { %845 = vmatprep.mubr.bf16.mxu1 %v3365_v2  ;;  %1404 = vmatpush1.bf16.msra.mxu1 %v3239_v32 }
  0x4d   : > { %1405 = vmatprep.subr.bf16.mxu1 %v3244_v33  ;;  %1707 = vrot.lane.b32.xlu1 %v3675_v57, %s3367_s13 }
  0x4e   : > { %1709 = vrot.lane.b32.xlu0 %v3678_v58, %s3367_s13 }
  0x50   : > { %1406 = vmatpush1.bf16.msra.mxu1 %v3242_v34 }
  0x51   : > { %1407 = vmatprep.subr.bf16.mxu1 %v3247_v36  ;;  %1711 = vrot.lane.b32.xlu1 %v3691_v61, %s3367_s13 }
  0x52   : > { %3008 = vmatmul.mubr.msk.bf16.gmra.mxu0 %vm451_vm0, %v3211_v18  ;;  %v3284_v18 = vld [vmem:[%s5000_s6 + $0x100] ss:$8 sps:$4 sm:$0xff]   ;;  %1713 = vrot.lane.b32.xlu0 %v3694_v62, %s3367_s13  ;;  %vm2465_vm0 = vcmask 917312  }
  0x53   : > { %3034 = vmatmul.mubr.msk.bf16.gmra.mxu1 %vm758_vm1, %v3222_v29  ;;  %3140 = vmatprep.mubr.msk.bf16.mxu0 %vm758_vm1, %v3219_v19 }
  0x54   : > { %855 = vmatprep.mubr.bf16.mxu1 %v3365_v2  ;;  %1408 = vmatpush1.bf16.msra.mxu1 %v3245_v37 }
  0x55   : > { %1409 = vmatprep.subr.bf16.mxu1 %v3250_v38  ;;  %1715 = vrot.lane.b32.xlu1 %v1628_v1, %s3367_s13 }
  0x56   : > { %1717 = vrot.lane.b32.xlu0 %v1629_v3, %s3367_s13 }
  0x58   : > { %1410 = vmatpush1.bf16.msra.mxu1 %v3248_v39 }
  0x59   : > { %1411 = vmatprep.subr.bf16.mxu1 %v3253_v41  ;;  %1719 = vrot.lane.b32.xlu1 %v1630_v4, %s3367_s13 }
  0x5a   : > { %3141 = vmatmul.mubr.msk.bf16.vlgmr.msra.gmra.mxu0 %vm758_vm1, %v3220_v24  ;;  %1721 = vrot.lane.b32.xlu0 %v1631_v5, %s3367_s13 }
  0x5b   : > { %3035 = vmatmul.mubr.msk.bf16.gmra.mxu1 %vm758_vm1, %v3223_v30  ;;  %3144 = vmatprep.mubr.msk.bf16.mxu0 %vm758_vm1, %v3221_v28 }
  0x5c   : > { %865 = vmatprep.mubr.bf16.mxu1 %v3365_v2  ;;  %1412 = vmatpush2.bf16.msra.mxu1 %v3251_v42 }
  0x5d   : > { %1413 = vmatprep.subr.bf16.mxu1 %v3256_v43  ;;  %1517 = vmatpush1.bf16.msra.mxu0 %v3275_v6 }
  0x5e   : > { %1518 = vmatprep.subr.bf16.mxu0 %v3280_v13  ;;  %1723 = vrot.lane.b32.xlu1 %v1632_v8, %s3367_s13 }
  0x5f   : > { %1725 = vrot.lane.b32.xlu0 %v1633_v9, %s3367_s13 }
  0x60   : > { %1414 = vmatpush2.bf16.msra.mxu1 %v3254_v45  ;;  %v5003_v45 = vlaneseq }
  0x61   : > { %1415 = vmatprep.subr.bf16.mxu1 %v3259_v46  ;;  %1519 = vmatpush1.bf16.msra.mxu0 %v3278_v12 }
  0x62   : > { %3145 = vmatmul.mubr.msk.bf16.gmra.mxu0 %vm758_vm1, %v3222_v29  ;;  %1520 = vmatprep.subr.bf16.mxu0 %v3283_v16 }
  0x63   : > { %3036 = vmatmul.mubr.msk.bf16.gmra.mxu1 %vm758_vm1, %v3224_v35  ;;  %3148 = vmatprep.mubr.msk.bf16.mxu0 %vm758_vm1, %v3223_v30 }
  0x64   : > { %875 = vmatprep.mubr.bf16.mxu1 %v3365_v2  ;;  %1416 = vmatpush2.bf16.msra.mxu1 %v3257_v47 }
  0x65   : > { %1417 = vmatprep.subr.bf16.mxu1 %v3262_v48  ;;  %1521 = vmatpush1.bf16.msra.mxu0 %v3281_v15 }
  0x66   : > { %1522 = vmatprep.subr.bf16.mxu0 %v3286_v17  ;;  %1727 = vrot.lane.b32.xlu1 %v1634_v10, %s3367_s13 }
  0x67   : > { %1729 = vrot.lane.b32.xlu0 %v3726_v11, %s3367_s13 }
  0x68   : > { %1418 = vmatpush2.bf16.msra.mxu1 %v3260_v49 }
  0x69   : > { %1419 = vmatprep.subr.bf16.mxu1 %v3265_v51  ;;  %1523 = vmatpush1.bf16.msra.mxu0 %v3284_v18  ;;  %v3844_v51 = vshrl.u32 %v5003_v45, 7 }
  0x6a   : > { %3149 = vmatmul.mubr.msk.bf16.gmra.mxu0 %vm758_vm1, %v3224_v35  ;;  %1731 = vrot.lane.b32.xlu1 %v1636_v14, %s3367_s13 }
  0x6b   : > { %3037 = vmatmul.mubr.msk.bf16.gmra.mxu1 %vm758_vm1, %v3225_v40  ;;  %3152 = vmatprep.mubr.msk.bf16.mxu0 %vm758_vm1, %v3225_v40  ;;  %5014 = vst [vmem:[#allocation5_spill] sm:$0xff] %v3844_v51 }
  0x6c   : > { %885 = vmatprep.mubr.bf16.mxu1 %v3365_v2  ;;  %1420 = vmatpush2.bf16.msra.mxu1 %v3263_v52 }
  0x6d   : > { %1421 = vmatprep.subr.bf16.mxu1 %v3268_v55  ;;  %1749 = vrot.lane.b32.xlu0 %v3648_v50, %s3368_s19 }
  0x6e   : > { %1751 = vrot.lane.b32.xlu1 %v3662_v54, %s3368_s19 }
  0x70   : > { %1422 = vmatpush2.bf16.msra.mxu1 %v3266_v56  ;;  %v5004_v56 = vsub.s32 1, %v3844_v51 }
  0x71   : > { %1423 = vmatprep.subr.bf16.mxu1 %v3271_v59  ;;  %1753 = vrot.lane.b32.xlu0 %v3659_v53, %s3368_s19  ;;  %v3857_v59 = vld [vmem:[%s4999_s5] sm:$0x7] }
  0x72   : > { %3153 = vmatmul.mubr.msk.bf16.gmra.mxu0 %vm758_vm1, %v3226_v44  ;;  %1755 = vrot.lane.b32.xlu1 %v3675_v57, %s3368_s19 }
  0x73   : > { %3038 = vmatmul.mubr.msk.bf16.gmra.mxu1 %vm758_vm1, %v3226_v44  ;;  %1540 = vmatprep.mubr.bf16.mxu0 %v3365_v2 }
  0x74   : > { %1424 = vmatpush2.bf16.msra.mxu1 %v3269_v60 }
  0x75   : > { %1425 = vmatprep.subr.bf16.mxu1 %v3274_v63  ;;  %1757 = vrot.lane.b32.xlu0 %v3678_v58, %s3368_s19  ;;  %v5005_v58 = vsub.s32 0, %v3844_v51  ;;  %v3864_v63 = vrot.slane %v3857_v59, %v5004_v56 }
  0x76   : > { %1759 = vrot.lane.b32.xlu1 %v3691_v61, %s3368_s19 }
  0x78   : > { %1426 = vmatpush2.bf16.msra.mxu1 %v3272_v0 }
  0x79   : > { %1761 = vrot.lane.b32.xlu0 %v3694_v62, %s3368_s19 }
  0x7a   : > { %1763 = vrot.lane.b32.xlu1 %v1628_v1, %s3368_s19 }
  0x7d   : > { %1765 = vrot.lane.b32.xlu0 %v1629_v3, %s3368_s19  ;;  %v3871_v3 = vrot.slane %v3857_v59, %v5005_v58 }
  0x7e   : > { %1767 = vrot.lane.b32.xlu1 %v1630_v4, %s3368_s19 }
  0x81   : > { %1769 = vrot.lane.b32.xlu0 %v1631_v5, %s3368_s19 }
  0x82   : > { %1771 = vrot.lane.b32.xlu1 %v1632_v8, %s3368_s19 }
  0x85   : > { %1773 = vrot.lane.b32.xlu0 %v1633_v9, %s3368_s19 }
  0x86   : > { %1775 = vrot.lane.b32.xlu1 %v1634_v10, %s3368_s19 }
  0x89   : > { %1777 = vrot.lane.b32.xlu0 %v3726_v11, %s3368_s19 }
  0x8a   : > { %1779 = vrot.lane.b32.xlu1 %v1636_v14, %s3368_s19 }
  0xda   : > { %v510_v19 = vpop.f32.mrf.mxu0 }
  0xdb   : > { %v3799_v20 = vpop.f32.mrf.mxu1 }
  0xdc   : > { %v512_v21 = vpop.f32.mrf.mxu0 }
  0xdd   : > { %v3801_v22 = vpop.f32.mrf.mxu1 }
  0xde   : > { %v514_v23 = vpop.f32.mrf.mxu0 }
  0xdf   : > { %v3803_v24 = vpop.f32.mrf.mxu1 }
  0xe0   : > { %v516_v25 = vpop.f32.mrf.mxu0 }
  0xe1   : > { %v3805_v26 = vpop.f32.mrf.mxu1 }
  0xe2   : > { %v520_v27 = vpop.f32.mrf.mxu0 }
  0xe3   : > { %v3807_v28 = vpop.f32.mrf.mxu1 }
  0xe4   : > { %v522_v29 = vpop.f32.mrf.mxu0 }
  0xe5   : > { %v3809_v30 = vpop.f32.mrf.mxu1 }
  0xe6   : > { %v524_v31 = vpop.f32.mrf.mxu0 }
  0xe7   : > { %v3811_v32 = vpop.f32.mrf.mxu1 }
  0xe8   : > { %v526_v33 = vpop.f32.mrf.mxu0 }
  0xe9   : > { %v3813_v34 = vpop.f32.mrf.mxu1 }
  0xea   : > { %v3815_v35 = vpop.f32.mrf.mxu0 }
  0xeb   : > { %v3817_v36 = vpop.f32.mrf.mxu1 }
  0xec   : > { %v3819_v37 = vpop.f32.mrf.mxu0 }
  0xed   : > { %v3821_v38 = vpop.f32.mrf.mxu1 }
  0xee   : > { %v3823_v39 = vpop.f32.mrf.mxu0 }
  0xef   : > { %v3825_v40 = vpop.f32.mrf.mxu1 }
  0xf0   : > { %v3827_v41 = vpop.f32.mrf.mxu0 }
  0xf1   : > { %v3829_v42 = vpop.f32.mrf.mxu1 }
  0xf2   : > { %v3831_v43 = vpop.f32.mrf.mxu0 }
  0xf3   : > { %v3833_v44 = vpop.f32.mrf.mxu1 }
  0xf4   : > { %v3835_v46 = vpop.f32.mrf.mxu0 }
  0xf5   : > { %v3837_v47 = vpop.f32.mrf.mxu1 }
  0xf6   : > { %v3839_v48 = vpop.f32.mrf.mxu0 }
  0xf7   : > { %v3841_v49 = vpop.f32.mrf.mxu1 }
  0xf8   : > { %v3846_v52 = vpop.f32.mrf.mxu0 }
  0xf9   : > { %v3848_v53 = vpop.f32.mrf.mxu1 }
  0xfa   : > { %v3850_v55 = vpop.f32.mrf.mxu0 }
  0xfb   : > { %v817_v57 = vpop.f32.mrf.mxu1 }
  0xfc   : > { %v3859_v60 = vpop.f32.mrf.mxu0  ;;  %v818_v1 = vadd.f32 %v817_v57, %v510_v19 }
  0xfd   : > { %v819_v61 = vpop.f32.mrf.mxu1 }
  0xfe   : > { %v820_v62 = vadd.f32 %v819_v61, %v512_v21  ;;  %v3866_v0 = vpop.f32.mrf.mxu0  ;;  %v1010_v13 = vadd.f32 %v3871_v3, %v818_v1 }
  0xff   : > { %v821_v4 = vpop.f32.mrf.mxu1 }
 0x100   : > { %v822_v5 = vadd.f32 %v821_v4, %v514_v23  ;;  %v3873_v6 = vpop.f32.mrf.mxu0  ;;  %v1011_v8 = vadd.f32 %v3864_v63, %v820_v62  ;;  %v1058_v61 = vmax.f32 %v1010_v13, 0.0 }
 0x101   : > { %v823_v7 = vpop.f32.mrf.mxu1 }
 0x102   : > { %v1013_v9 = vadd.f32 %v3871_v3, %v822_v5  ;;  %v824_v10 = vadd.f32 %v823_v7, %v516_v25  ;;  %v3877_v12 = vpop.f32.mrf.mxu0  ;;  %v1059_v19 = vmax.f32 %v1011_v8, 0.0 }
 0x103   : > { %v827_v14 = vpop.f32.mrf.mxu1 }
 0x104   : > { %v1014_v15 = vadd.f32 %v3864_v63, %v824_v10  ;;  %v3881_v16 = vpop.f32.mrf.mxu0  ;;  %v1061_v17 = vmax.f32 %v1013_v9, 0.0  ;;  %v828_v62 = vadd.f32 %v827_v14, %v520_v27 }
 0x105   : > { %v829_v18 = vpop.f32.mrf.mxu1 }
 0x106   : > { %v1062_v21 = vmax.f32 %v1014_v15, 0.0  ;;  %v830_v23 = vadd.f32 %v829_v18, %v522_v29  ;;  %v3883_v57 = vpop.f32.mrf.mxu0  ;;  %v1106_v1 = vpack.c.bf16 %v1061_v17, %v1058_v61  ;;  %v1016_v29 = vadd.f32 %v3871_v3, %v828_v62 }
 0x107   : > { %v831_v4 = vpop.f32.mrf.mxu1 }
 0x108   : > { %v832_v25 = vadd.f32 %v831_v4, %v524_v31  ;;  %v3885_v5 = vpop.f32.mrf.mxu0  ;;  %v1107_v7 = vpack.c.bf16 %v1062_v21, %v1059_v19  ;;  %v1017_v10 = vadd.f32 %v3864_v63, %v830_v23 }
 0x109   : > { %v833_v45 = vpop.f32.mrf.mxu1 }
 0x10a   : > { %v1019_v56 = vadd.f32 %v3871_v3, %v832_v25  ;;  %v834_v9 = vadd.f32 %v833_v45, %v526_v33  ;;  %v3889_v58 = vpop.f32.mrf.mxu0  ;;  %1427 = vmatprep.mubr.bf16.mxu1 %v1107_v7  ;;  %v1065_v15 = vmax.f32 %v1017_v10, 0.0  ;;  %v1064_v33 = vmax.f32 %v1016_v29, 0.0 }
 0x10b   : > { %v837_v8 = vpop.f32.mrf.mxu1  ;;  %1428 = vmatmul.mubr.bf16.vlgmr.msra.gmra.mxu1 %v1106_v1 }
 0x10c   : > { %v1020_v27 = vadd.f32 %v3864_v63, %v834_v9  ;;  %v3893_v31 = vpop.f32.mrf.mxu0  ;;  %v1067_v13 = vmax.f32 %v1019_v56, 0.0  ;;  %v838_v45 = vadd.f32 %v837_v8, %v3815_v35 }
 0x10d   : > { %v839_v14 = vpop.f32.mrf.mxu1 }
 0x10e   : > { %v1068_v17 = vmax.f32 %v1020_v27, 0.0  ;;  %v840_v18 = vadd.f32 %v839_v14, %v3819_v37  ;;  %v3896_v19 = vpop.f32.mrf.mxu0  ;;  %v1109_v25 = vpack.c.bf16 %v1067_v13, %v1064_v33  ;;  %v1022_v10 = vadd.f32 %v3871_v3, %v838_v45 }
 0x10f   : > { %v841_v21 = vpop.f32.mrf.mxu1  ;;  %v1005_v33 = vsub.s32 2, %v3844_v51 }
 0x110   : > { %v842_v23 = vadd.f32 %v841_v21, %v3823_v39  ;;  %v3900_v61 = vpop.f32.mrf.mxu0  ;;  %v1110_v62 = vpack.c.bf16 %v1068_v17, %v1065_v15  ;;  %v1023_v56 = vadd.f32 %v3864_v63, %v840_v18 }
 0x111   : > { %v843_v4 = vpop.f32.mrf.mxu1 }
 0x112   : > { %v1025_v7 = vadd.f32 %v3871_v3, %v842_v23  ;;  %v844_v1 = vadd.f32 %v843_v4, %v3827_v41  ;;  %v3905_v37 = vpop.f32.mrf.mxu0  ;;  %1437 = vmatprep.mubr.bf16.mxu1 %v1110_v62  ;;  %v1071_v27 = vmax.f32 %v1023_v56, 0.0  ;;  %v1070_v41 = vmax.f32 %v1022_v10, 0.0 }
 0x113   : > { %v847_v35 = vpop.f32.mrf.mxu1  ;;  %1438 = vmatmul.mubr.bf16.gmra.mxu1 %v1109_v25  ;;  %v3925_v10 = vrot.slane %v3857_v59, %v1005_v33 }
 0x114   : > { %v1026_v39 = vadd.f32 %v3864_v63, %v844_v1  ;;  %v3909_v9 = vpop.f32.mrf.mxu0  ;;  %v1073_v29 = vmax.f32 %v1025_v7, 0.0  ;;  %v848_v17 = vadd.f32 %v847_v35, %v3831_v43 }
 0x115   : > { %v849_v8 = vpop.f32.mrf.mxu1 }
 0x116   : > { %v1074_v13 = vmax.f32 %v1026_v39, 0.0  ;;  %v850_v14 = vadd.f32 %v849_v8, %v3835_v46  ;;  %v3912_v15 = vpop.f32.mrf.mxu0  ;;  %v1112_v4 = vpack.c.bf16 %v1073_v29, %v1070_v41  ;;  %v1028_v43 = vadd.f32 %v3871_v3, %v848_v17 }
 0x117   : > { %v851_v18 = vpop.f32.mrf.mxu1 }
 0x118   : > { %v852_v45 = vadd.f32 %v851_v18, %v3839_v48  ;;  %v3917_v21 = vpop.f32.mrf.mxu0  ;;  %v1113_v23 = vpack.c.bf16 %v1074_v13, %v1071_v27  ;;  %v1029_v25 = vadd.f32 %v3864_v63, %v850_v14 }
 0x119   : > { %v853_v62 = vpop.f32.mrf.mxu1 }
 0x11a   : > { %v1031_v56 = vadd.f32 %v3871_v3, %v852_v45  ;;  %v854_v46 = vadd.f32 %v853_v62, %v3846_v52  ;;  %v3142_v7 = vpop.f32.mrf.mxu0  ;;  %1447 = vmatprep.mubr.bf16.mxu1 %v1113_v23  ;;  %v1077_v13 = vmax.f32 %v1029_v25, 0.0 }
 0x11b   : > { %v939_v1 = vadd.f32 %v3142_v7, %v3799_v20  ;;  %v857_v48 = vpop.f32.mrf.mxu1  ;;  %1448 = vmatmul.mubr.bf16.gmra.mxu1 %v1112_v4  ;;  %v1076_v20 = vmax.f32 %v1028_v43, 0.0 }
 0x11c   : > { %v1032_v35 = vadd.f32 %v3864_v63, %v854_v46  ;;  %v930_v39 = vpop.f32.mrf.mxu0  ;;  %v1079_v29 = vmax.f32 %v1031_v56, 0.0  ;;  %v858_v14 = vadd.f32 %v857_v48, %v3850_v55 }
 0x11d   : > { %v931_v8 = vadd.f32 %v930_v39, %v3801_v22  ;;  %v859_v27 = vpop.f32.mrf.mxu1  ;;  %v1018_v59 = vadd.f32 %v3925_v10, %v939_v1 }
 0x11e   : > { %v1080_v52 = vmax.f32 %v1032_v35, 0.0  ;;  %v860_v41 = vadd.f32 %v859_v27, %v3859_v60  ;;  %v3143_v17 = vpop.f32.mrf.mxu0  ;;  %v1115_v56 = vpack.c.bf16 %v1079_v29, %v1076_v20  ;;  %v1034_v60 = vadd.f32 %v3871_v3, %v858_v14 }
 0x11f   : > { %v942_v18 = vadd.f32 %v3143_v17, %v3803_v24  ;;  %v861_v33 = vpop.f32.mrf.mxu1  ;;  %v1012_v45 = vadd.f32 %v3925_v10, %v931_v8  ;;  %v1066_v1 = vmax.f32 %v1018_v59, 0.0 }
 0x120   : > { %v862_v23 = vadd.f32 %v861_v33, %v3866_v0  ;;  %v933_v62 = vpop.f32.mrf.mxu0  ;;  %v1116_v22 = vpack.c.bf16 %v1080_v52, %v1077_v13  ;;  %v1035_v46 = vadd.f32 %v3864_v63, %v860_v41 }
 0x121   : > { %v1021_v4 = vadd.f32 %v3925_v10, %v942_v18  ;;  %v934_v25 = vadd.f32 %v933_v62, %v3805_v26  ;;  %v863_v55 = vpop.f32.mrf.mxu1  ;;  %v1060_v26 = vmax.f32 %v1012_v45, 0.0  ;;  %v1082_v18 = vmax.f32 %v1034_v60, 0.0 }
 0x122   : > { %v1037_v7 = vadd.f32 %v3871_v3, %v862_v23  ;;  %v864_v24 = vadd.f32 %v863_v55, %v3873_v6  ;;  %v3146_v43 = vpop.f32.mrf.mxu0  ;;  %1457 = vmatprep.mubr.bf16.mxu1 %v1116_v22  ;;  %v1083_v17 = vmax.f32 %v1035_v46, 0.0 }
 0x123   : > { %v1069_v0 = vmax.f32 %v1021_v4, 0.0  ;;  %v1015_v48 = vadd.f32 %v3925_v10, %v934_v25  ;;  %v955_v35 = vadd.f32 %v3146_v43, %v3807_v28  ;;  %v867_v39 = vpop.f32.mrf.mxu1  ;;  %1458 = vmatmul.mubr.bf16.gmra.mxu1 %v1115_v56 }
 0x124   : > { %v1085_v29 = vmax.f32 %v1037_v7, 0.0  ;;  %v1038_v8 = vadd.f32 %v3864_v63, %v864_v24  ;;  %v946_v27 = vpop.f32.mrf.mxu0  ;;  %v868_v6 = vadd.f32 %v867_v39, %v3877_v12 }
 0x125   : > { %v3944_v13 = vpack.c.bf16 %v1069_v0, %v1066_v1  ;;  %v1063_v52 = vmax.f32 %v1015_v48, 0.0  ;;  %v947_v14 = vadd.f32 %v946_v27, %v3809_v30  ;;  %v869_v41 = vpop.f32.mrf.mxu1  ;;  %v1030_v45 = vadd.f32 %v3925_v10, %v955_v35 }
 0x126   : > { %v1086_v20 = vmax.f32 %v1038_v8, 0.0  ;;  %v870_v59 = vadd.f32 %v869_v41, %v3881_v16  ;;  %v3147_v28 = vpop.f32.mrf.mxu0  ;;  %v1040_v25 = vadd.f32 %v3871_v3, %v868_v6  ;;  %v1118_v60 = vpack.c.bf16 %v1085_v29, %v1082_v18 }
 0x127   : > { %v1108_v33 = vpack.c.bf16 %v1063_v52, %v1060_v26  ;;  %v958_v23 = vadd.f32 %v3147_v28, %v3811_v32  ;;  %v871_v62 = vpop.f32.mrf.mxu1  ;;  %v1024_v22 = vadd.f32 %v3925_v10, %v947_v14 }
 0x128   : > { %v872_v12 = vadd.f32 %v871_v62, %v3883_v57  ;;  %v949_v4 = vpop.f32.mrf.mxu0  ;;  %v1119_v30 = vpack.c.bf16 %v1086_v20, %v1083_v17  ;;  %v1041_v46 = vadd.f32 %v3864_v63, %v870_v59  ;;  %v1078_v57 = vmax.f32 %v1030_v45, 0.0 }
 0x129   : > { %v1033_v55 = vadd.f32 %v3925_v10, %v958_v23  ;;  %v950_v16 = vadd.f32 %v949_v4, %v3813_v34  ;;  %v873_v56 = vpop.f32.mrf.mxu1  ;;  %3087 = vmatmul.mubr.msk.bf16.vlgmr.msra.gmra.mxu0 %vm1370_vm2, %v1108_v33  ;;  %v1072_v48 = vmax.f32 %v1024_v22, 0.0  ;;  %v1088_v17 = vmax.f32 %v1040_v25, 0.0 }
 0x12a   : > { %v1043_v32 = vadd.f32 %v3871_v3, %v872_v12  ;;  %v874_v7 = vadd.f32 %v873_v56, %v3885_v5  ;;  %v3150_v24 = vpop.f32.mrf.mxu0  ;;  %1467 = vmatprep.mubr.bf16.mxu1 %v1119_v30  ;;  %1550 = vmatprep.mubr.bf16.mxu0 %v3365_v2  ;;  %v1089_v6 = vmax.f32 %v1041_v46, 0.0 }
 0x12b   : > { %v1081_v43 = vmax.f32 %v1033_v55, 0.0  ;;  %v1027_v1 = vadd.f32 %v3925_v10, %v950_v16  ;;  %v971_v34 = vadd.f32 %v3150_v24, %v3817_v36  ;;  %v877_v0 = vpop.f32.mrf.mxu1  ;;  %1468 = vmatmul.mubr.bf16.gmra.mxu1 %v1118_v60 }
 0x12c   : > { %v1091_v35 = vmax.f32 %v1043_v32, 0.0  ;;  %v1044_v39 = vadd.f32 %v3864_v63, %v874_v7  ;;  %v962_v26 = vpop.f32.mrf.mxu0  ;;  %v878_v8 = vadd.f32 %v877_v0, %v3889_v58 }
 0x12d   : > { %v3964_v29 = vpack.c.bf16 %v1081_v43, %v1078_v57  ;;  %v1075_v5 = vmax.f32 %v1027_v1, 0.0  ;;  %v963_v27 = vadd.f32 %v962_v26, %v3821_v38  ;;  %v879_v52 = vpop.f32.mrf.mxu1  ;;  %v1042_v59 = vadd.f32 %v3925_v10, %v971_v34 }
 0x12e   : > { %v1092_v14 = vmax.f32 %v1044_v39, 0.0  ;;  %v880_v41 = vadd.f32 %v879_v52, %v3893_v31  ;;  %v3151_v36 = vpop.f32.mrf.mxu0  ;;  %v1046_v38 = vadd.f32 %v3871_v3, %v878_v8  ;;  %v1121_v12 = vpack.c.bf16 %v1091_v35, %v1088_v17 }
 0x12f   : > { %v1114_v20 = vpack.c.bf16 %v1075_v5, %v1072_v48  ;;  %v974_v28 = vadd.f32 %v3151_v36, %v3825_v40  ;;  %v881_v18 = vpop.f32.mrf.mxu1  ;;  %v1036_v33 = vadd.f32 %v3925_v10, %v963_v27  ;;  %v1090_v25 = vmax.f32 %v1042_v59, 0.0 }
 0x130   : > { %v882_v45 = vadd.f32 %v881_v18, %v3896_v19  ;;  %v965_v58 = vpop.f32.mrf.mxu0  ;;  %v1122_v23 = vpack.c.bf16 %v1092_v14, %v1089_v6  ;;  %v1047_v40 = vadd.f32 %v3864_v63, %v880_v41  ;;  %v1094_v43 = vmax.f32 %v1046_v38, 0.0 }
 0x131   : > { %v1045_v62 = vadd.f32 %v3925_v10, %v974_v28  ;;  %v966_v31 = vadd.f32 %v965_v58, %v3829_v42  ;;  %v883_v22 = vpop.f32.mrf.mxu1  ;;  %3088 = vmatmul.mubr.msk.bf16.gmra.mxu0 %vm1370_vm2, %v3944_v13  ;;  %v1084_v13 = vmax.f32 %v1036_v33, 0.0 }
 0x132   : > { %v1049_v4 = vadd.f32 %v3871_v3, %v882_v45  ;;  %v884_v30 = vadd.f32 %v883_v22, %v3900_v61  ;;  %v3154_v19 = vpop.f32.mrf.mxu0  ;;  %1477 = vmatprep.mubr.bf16.mxu1 %v1122_v23  ;;  %1560 = vmatprep.mubr.bf16.mxu0 %v3365_v2  ;;  %v1095_v1 = vmax.f32 %v1047_v40, 0.0  ;;  %v4018_v22 = vpop.permute.xlu1 %1657 }
 0x133   : > { %v1093_v55 = vmax.f32 %v1045_v62, 0.0  ;;  %v1039_v16 = vadd.f32 %v3925_v10, %v966_v31  ;;  %v987_v42 = vadd.f32 %v3154_v19, %v3833_v44  ;;  %v887_v56 = vpop.f32.mrf.mxu1  ;;  %1478 = vmatmul.mubr.bf16.gmra.mxu1 %v1121_v12 }
 0x134   : > { %v1050_v60 = vadd.f32 %v3864_v63, %v884_v30  ;;  %v978_v46 = vpop.f32.mrf.mxu0  ;;  %v1097_v7 = vmax.f32 %v1049_v4, 0.0  ;;  %v888_v39 = vadd.f32 %v887_v56, %v3905_v37 }
 0x135   : > { %v1123_v32 = vpack.c.bf16 %v1093_v55, %v1090_v25  ;;  %v1087_v24 = vmax.f32 %v1039_v16, 0.0  ;;  %v979_v61 = vadd.f32 %v978_v46, %v3837_v47  ;;  %v889_v57 = vpop.f32.mrf.mxu1  ;;  %v1054_v44 = vadd.f32 %v3925_v10, %v987_v42 }
 0x136   : > { %v1098_v34 = vmax.f32 %v1050_v60, 0.0  ;;  %v890_v0 = vadd.f32 %v889_v57, %v3909_v9  ;;  %v3155_v48 = vpop.f32.mrf.mxu0  ;;  %v1124_v41 = vpack.c.bf16 %v1097_v7, %v1094_v43  ;;  %v1052_v17 = vadd.f32 %v3871_v3, %v888_v39  ;;  %v4022_v40 = vpop.permute.xlu1 %1659 }
 0x137   : > { %v1120_v35 = vpack.c.bf16 %v1087_v24, %v1084_v13  ;;  %v990_v26 = vadd.f32 %v3155_v48, %v3841_v49  ;;  %v891_v5 = vpop.f32.mrf.mxu1  ;;  %v1048_v47 = vadd.f32 %v3925_v10, %v979_v61 }
 0x138   : > { %v892_v8 = vadd.f32 %v891_v5, %v3912_v15  ;;  %v981_v27 = vpop.f32.mrf.mxu0  ;;  %v1125_v52 = vpack.c.bf16 %v1098_v34, %v1095_v1  ;;  %v1053_v36 = vadd.f32 %v3864_v63, %v890_v0  ;;  %v1102_v15 = vmax.f32 %v1054_v44, 0.0 }
 0x139   : > { %v1057_v6 = vadd.f32 %v3925_v10, %v990_v26  ;;  %v982_v14 = vadd.f32 %v981_v27, %v3848_v53  ;;  %v893_v9 = vpop.f32.mrf.mxu1  ;;  %3089 = vmatmul.mubr.msk.bf16.gmra.mxu0 %vm1370_vm2, %v1114_v20  ;;  %v1096_v20 = vmax.f32 %v1048_v47, 0.0  ;;  %v1100_v38 = vmax.f32 %v1052_v17, 0.0 }
 0x13a   : > { %v1055_v37 = vadd.f32 %v3871_v3, %v892_v8  ;;  %v894_v49 = vadd.f32 %v893_v9, %v3917_v21  ;;  %1487 = vmatprep.mubr.bf16.mxu1 %v1125_v52  ;;  %1570 = vmatprep.mubr.bf16.mxu0 %v3365_v2  ;;  %v1101_v58 = vmax.f32 %v1053_v36, 0.0  ;;  %v4026_v30 = vpop.permute.xlu1 %1663 }
 0x13b   : > { %v1105_v59 = vmax.f32 %v1057_v6, 0.0  ;;  %v1051_v28 = vadd.f32 %v3925_v10, %v982_v14  ;;  %1488 = vmatmul.mubr.bf16.gmra.mxu1 %v1124_v41  ;;  %v1846_v41 = vld [vmem:[%s5001_s7] sm:$0x3] }
 0x13c   : > { %v1056_v53 = vadd.f32 %v3864_v63, %v894_v49  ;;  %v1103_v33 = vmax.f32 %v1055_v37, 0.0  ;;  %v1654_v63 = vpop.permute.xlu0 %1653 }
 0x13d   : > { %v1129_v18 = vpack.c.bf16 %v1105_v59, %v1102_v15  ;;  %v1099_v45 = vmax.f32 %v1051_v28, 0.0  ;;  %v1797_v14 = vsel %vm758_vm1, %v3648_v50, %v1654_v63  ;;  %v5023_v59 = vsub.s32 0, %v3844_v51 }
 0x13e   : > { %v1104_v23 = vmax.f32 %v1056_v53, 0.0  ;;  %v1127_v31 = vpack.c.bf16 %v1103_v33, %v1100_v38  ;;  %v4030_v19 = vpop.permute.xlu1 %1667  ;;  %v5024_v53 = vsub.s32 1, %v3844_v51 }
 0x13f   : > { %v1126_v21 = vpack.c.bf16 %v1099_v45, %v1096_v20  ;;  %v4098_v28 = vrot.slane %v1846_v41, %v5023_v59 }
 0x140   : > { %v1128_v62 = vpack.c.bf16 %v1104_v23, %v1101_v58  ;;  %v4012_v3 = vpop.permute.xlu0 %1655  ;;  %v4102_v20 = vrot.slane %v1846_v41, %v5024_v53 }
 0x141   : > { %3090 = vmatmul.mubr.msk.bf16.gmra.mxu0 %vm1370_vm2, %v3964_v29 }
 0x142   : > { %1497 = vmatprep.mubr.bf16.mxu1 %v1128_v62  ;;  %1580 = vmatprep.mubr.bf16.mxu0 %v3365_v2  ;;  %v4034_v55 = vpop.permute.xlu1 %1671 }
 0x143   : > { %1498 = vmatmul.mubr.bf16.gmra.mxu1 %v1127_v31 }
 0x144   : > { %v4014_v10 = vpop.permute.xlu0 %1661 }
 0x146   : > { %v4036_v42 = vpop.permute.xlu1 %1675 }
 0x147   : > { %5017 = vst [vmem:[#allocation8_spill] sm:$0xff] %v4036_v42 }
 0x148   : > { %v4016_v29 = vpop.permute.xlu0 %1665 }
 0x149   : > { %3091 = vmatmul.mubr.msk.bf16.gmra.mxu0 %vm1370_vm2, %v1120_v35 }
 0x14a   : > { %1590 = vmatprep.mubr.bf16.mxu0 %v3365_v2  ;;  %v4040_v13 = vpop.permute.xlu1 %1679 }
 0x14b   : > { %5018 = vst [vmem:[#allocation9_spill] sm:$0xff] %v4040_v13 }
 0x14c   : > { %v4020_v12 = vpop.permute.xlu0 %1669 }
 0x14e   : > { %v4044_v46 = vpop.permute.xlu1 %1683 }
 0x14f   : > { %5019 = vst [vmem:[#allocation10_spill] sm:$0xff] %v4044_v46 }
 0x150   : > { %v4024_v4 = vpop.permute.xlu0 %1673 }
 0x151   : > { %3092 = vmatmul.mubr.msk.bf16.gmra.mxu0 %vm1370_vm2, %v1123_v32 }
 0x152   : > { %1600 = vmatprep.mubr.bf16.mxu0 %v3365_v2  ;;  %v4048_v24 = vpop.permute.xlu1 %1703 }
 0x156   : > { %v4056_v34 = vpop.permute.xlu1 %1707 }
 0x159   : > { %3093 = vmatmul.mubr.msk.bf16.gmra.mxu0 %vm1370_vm2, %v1126_v21  ;;  %v1859_v21 = vsub.f32 %v3648_v50, %v4102_v20 }
 0x15a   : > { %1610 = vmatprep.mubr.bf16.mxu0 %v3365_v2  ;;  %v4028_v2 = vpop.permute.xlu0 %1677  ;;  %v4066_v39 = vpop.permute.xlu1 %1711 }
 0x15b   : > { %5015 = vst [vmem:[#allocation6_spill] sm:$0xff] %v4028_v2 }
 0x15e   : > { %v4032_v25 = vpop.permute.xlu0 %1681  ;;  %v4076_v52 = vpop.permute.xlu1 %1715 }
 0x15f   : > { %5016 = vst [vmem:[#allocation7_spill] sm:$0xff] %v4032_v25 }
 0x161   : > { %3094 = vmatmul.mubr.msk.bf16.gmra.mxu0 %vm1370_vm2, %v1129_v18 }
 0x162   : > { %v1702_v16 = vpop.permute.xlu0 %1701  ;;  %v4092_v49 = vpop.permute.xlu1 %1719 }
 0x163   : > { %v1813_v37 = vsel %vm1370_vm2, %v1797_v14, %v1702_v16 }
 0x166   : > { %v4038_v56 = vpop.permute.xlu0 %1705  ;;  %v4107_v58 = vpop.permute.xlu1 %1723 }
 0x167   : > { %5025 = vst [vmem:[#allocation14_spill] sm:$0xff] %v4107_v58 }
 0x16a   : > { %v4042_v60 = vpop.permute.xlu0 %1709  ;;  %v4116_v53 = vpop.permute.xlu1 %1727 }
 0x16b   : > { %5026 = vst [vmem:[#allocation15_spill] sm:$0xff] %v4116_v53 }
 0x16e   : > { %v4046_v32 = vpop.permute.xlu0 %1713 }
 0x172   : > { %v4050_v61 = vpop.permute.xlu0 %1717 }
 0x176   : > { %v4058_v0 = vpop.permute.xlu0 %1721 }
 0x177   : > { %5020 = vst [vmem:[#allocation11_spill] sm:$0xff] %v4058_v0  ;;  %v3289_v0 = vld [vmem:[%s3645_s18 + $0x10] sm:$0xff] }
 0x17a   : > { %v4068_v26 = vpop.permute.xlu0 %1725 }
 0x17b   : > { %5021 = vst [vmem:[#allocation12_spill] sm:$0xff] %v4068_v26 }
 0x17e   : > { %v4078_v47 = vpop.permute.xlu0 %1729 }
 0x17f   : > { %5022 = vst [vmem:[#allocation13_spill] sm:$0xff] %v4078_v47 }
 0x182   : > { %v1750_v15 = vpop.permute.xlu0 %1749 }
 0x183   : > { %v1830_v18 = vsel %vm1829_vm3, %v1813_v37, %v1750_v15 }
 0x184   : > { %v1858_v23 = vsub.f32 %v1830_v18, %v4098_v28 }
 0x1cb   : > { %v1429_v7 = vpop.f32.mrf.mxu1 }
 0x1cd   : > { %v1431_v57 = vpop.f32.mrf.mxu1 }
 0x1cf   : > { %v4052_v43 = vpop.f32.mrf.mxu1 }
 0x1d1   : > { %v4054_v1 = vpop.f32.mrf.mxu1 }
 0x1d3   : > { %v4060_v48 = vpop.f32.mrf.mxu1 }
 0x1d5   : > { %v4062_v35 = vpop.f32.mrf.mxu1 }
 0x1d7   : > { %v4064_v44 = vpop.f32.mrf.mxu1 }
 0x1d9   : > { %v4070_v5 = vpop.f32.mrf.mxu1 }
 0x1db   : > { %v4072_v8 = vpop.f32.mrf.mxu1 }
 0x1dd   : > { %v4074_v27 = vpop.f32.mrf.mxu1 }
 0x1df   : > { %v4080_v6 = vpop.f32.mrf.mxu1 }
 0x1e1   : > { %v4084_v9 = vpop.f32.mrf.mxu1 }
 0x1e3   : > { %v4089_v36 = vpop.f32.mrf.mxu1 }
 0x1e5   : > { %v4094_v17 = vpop.f32.mrf.mxu1 }
 0x1e7   : > { %v4105_v33 = vpop.f32.mrf.mxu1 }
 0x1e9   : > { %v1542_v45 = vpop.f32.mrf.mxu0  ;;  %v4112_v62 = vpop.f32.mrf.mxu1 }
 0x1ea   : > { %v1543_v38 = vadd.f32 %v1542_v45, %v1429_v7 }
 0x1eb   : > { %v1544_v31 = vpop.f32.mrf.mxu0  ;;  %v4114_v37 = vpop.f32.mrf.mxu1 }
 0x1ec   : > { %v1890_v63 = vsub.f32 %v1858_v23, %v1543_v38  ;;  %v1545_v16 = vadd.f32 %v1544_v31, %v1431_v57 }
 0x1ed   : > { %v1546_v14 = vpop.f32.mrf.mxu0  ;;  %v4122_v50 = vpop.f32.mrf.mxu1 }
 0x1ee   : > { %v1922_v41 = vmul.f32 %v1890_v63, %v1890_v63  ;;  %v1891_v59 = vsub.f32 %v1859_v21, %v1545_v16  ;;  %v4130_v21 = vpop.permute.xlu1 %1731  ;;  %v1547_v53 = vadd.f32 %v1546_v14, %v4052_v43 }
 0x1ef   : > { %v1548_v15 = vpop.f32.mrf.mxu0  ;;  %5027 = vst [vmem:[#allocation16_spill] sm:$0xff] %v4130_v21  ;;  %v4132_v31 = vpop.f32.mrf.mxu1 }
 0x1f0   : > { %2018 = vrot.lane.b32.xlu1 %v1922_v41, %s3368_s19  ;;  %v1954_v7 = vsel %vm758_vm1, %v1922_v41, 0.0  ;;  %v1923_v18 = vmul.f32 %v1891_v59, %v1891_v59  ;;  %v1798_v59 = vsel %vm758_vm1, %v3662_v54, %v4012_v3 }
 0x1f1   : > { %v4120_v45 = vpop.f32.mrf.mxu0  ;;  %1955 = vadd.xlane.f32.xlu0 %v1954_v7  ;;  %v4142_v7 = vpop.f32.mrf.mxu1 }
 0x1f2   : > { %v2306_v57 = vsel %vm758_vm1, %v1923_v18, 0.0  ;;  %5028 = vst [vmem:[#allocation17_spill] sm:$0xff] %v4142_v7  ;;  %v1752_v21 = vpop.permute.xlu1 %1751 }
 0x1f3   : > { %v4124_v23 = vpop.f32.mrf.mxu0  ;;  %v4150_v47 = vpop.f32.mrf.mxu1 }
 0x1f4   : > { %2114 = vrot.lane.b32.xlu1 %v1922_v41, %s3367_s13  ;;  %5029 = vst [vmem:[#allocation18_spill] sm:$0xff] %v4150_v47 }
 0x1f5   : > { %v4128_v38 = vpop.f32.mrf.mxu0  ;;  %2307 = vadd.xlane.f32.xlu0 %v2306_v57  ;;  %v1814_v57 = vsel %vm1370_vm2, %v1798_v59, %v4048_v24  ;;  %v4159_v26 = vpop.f32.mrf.mxu1 }
 0x1f6   : > { %5030 = vst [vmem:[#allocation19_spill] sm:$0xff] %v4159_v26 }
 0x1f7   : > { %v4134_v63 = vpop.f32.mrf.mxu0  ;;  %v4165_v58 = vpop.f32.mrf.mxu1 }
 0x1f8   : > { %2210 = vrot.lane.b32.xlu1 %v1922_v41, %s3366_s26  ;;  %v1831_v41 = vsel %vm1829_vm3, %v1814_v57, %v1752_v21  ;;  %5031 = vst [vmem:[#allocation20_spill] sm:$0xff] %v4165_v58 }
 0x1f9   : > { %v4137_v16 = vpop.f32.mrf.mxu0  ;;  %v1860_v3 = vsub.f32 %v1831_v41, %v4098_v28  ;;  %v4171_v21 = vpop.f32.mrf.mxu1 }
 0x1fa   : > { %5032 = vst [vmem:[#allocation21_spill] sm:$0xff] %v4171_v21 }
 0x1fb   : > { %v4144_v18 = vpop.f32.mrf.mxu0  ;;  %v1892_v24 = vsub.f32 %v1860_v3, %v1547_v53  ;;  %v4178_v57 = vpop.f32.mrf.mxu1  ;;  %v1549_v3 = vadd.f32 %v1548_v15, %v4054_v1 }
 0x1fc   : > { %5033 = vst [vmem:[#allocation22_spill] sm:$0xff] %v4178_v57 }
 0x1fd   : > { %v4148_v46 = vpop.f32.mrf.mxu0  ;;  %v1924_v7 = vmul.f32 %v1892_v24, %v1892_v24  ;;  %v1861_v24 = vsub.f32 %v3662_v54, %v4102_v20  ;;  %v4188_v21 = vpop.f32.mrf.mxu1 }
 0x1fe   : > { %5036 = vst [vmem:[#allocation25_spill] sm:$0xff] %v4188_v21 }
 0x1ff   : > { %v4152_v25 = vpop.f32.mrf.mxu0  ;;  %v1893_v57 = vsub.f32 %v1861_v24, %v1549_v3  ;;  %v1957_v54 = vsel %vm758_vm1, %v1924_v7, 0.0  ;;  %v1799_v3 = vsel %vm758_vm1, %v3289_v0, %v4018_v22 }
 0x201   : > { %v4156_v13 = vpop.f32.mrf.mxu0  ;;  %v1925_v21 = vmul.f32 %v1893_v57, %v1893_v57  ;;  %v1887_v57 = vsub.f32 %v3726_v11, %v4102_v20  ;;  %v3290_v11 = vld [vmem:[%s3645_s18 + $0x18] sm:$0xff] }
 0x203   : > { %v4161_v2 = vpop.f32.mrf.mxu0 }
 0x205   : > { %v4163_v59 = vpop.f32.mrf.mxu0 }
 0x207   : > { %v4167_v42 = vpop.f32.mrf.mxu0 }
 0x209   : > { %v4169_v51 = vpop.f32.mrf.mxu0 }
 0x20b   : > { %v4173_v43 = vpop.f32.mrf.mxu0  ;;  %2020 = vrot.lane.b32.xlu0 %v1924_v7, %s3368_s19 }
 0x20d   : > { %v4176_v14 = vpop.f32.mrf.mxu0 }
 0x20f   : > { %v4180_v53 = vpop.f32.mrf.mxu0  ;;  %2116 = vrot.lane.b32.xlu0 %v1924_v7, %s3367_s13 }
 0x210   : > { %5034 = vst [vmem:[#allocation23_spill] sm:$0xff] %v4180_v53  ;;  %v4195_v53 = vpop.f32.mrf.mxu1 }
 0x211   : > { %v4183_v41 = vpop.f32.mrf.mxu0  ;;  %5038 = vst [vmem:[#allocation27_spill] sm:$0xff] %v4195_v53 }
 0x212   : > { %5035 = vst [vmem:[#allocation24_spill] sm:$0xff] %v4183_v41  ;;  %v4201_v1 = vpop.f32.mrf.mxu1 }
 0x213   : > { %v4190_v58 = vpop.f32.mrf.mxu0  ;;  %2212 = vrot.lane.b32.xlu0 %v1924_v7, %s3366_s26  ;;  %5040 = vst [vmem:[#allocation29_spill] sm:$0xff] %v4201_v1  ;;  %v1815_v1 = vsel %vm1370_vm2, %v1799_v3, %v4038_v56  ;;  %v1754_v7 = vpop.permute.xlu0 %1753 }
 0x214   : > { %5037 = vst [vmem:[#allocation26_spill] sm:$0xff] %v4190_v58  ;;  %v4211_v24 = vpop.f32.mrf.mxu1  ;;  %v1832_v22 = vsel %vm1829_vm3, %v1815_v1, %v1754_v7  ;;  %v1557_v1 = vadd.f32 %v4128_v38, %v4064_v44  ;;  %v3291_v44 = vld [vmem:[%s3645_s18 + $0x20] sm:$0xff] }
 0x215   : > { %v4193_v26 = vpop.f32.mrf.mxu0  ;;  %5043 = vst [vmem:[#allocation32_spill] sm:$0xff] %v4211_v24  ;;  %v1801_v38 = vsel %vm758_vm1, %v3291_v44, %v4014_v10  ;;  %v1559_v10 = vadd.f32 %v4134_v63, %v4070_v5 }
 0x217   : > { %v4197_v47 = vpop.f32.mrf.mxu0 }
 0x218   : > { %5039 = vst [vmem:[#allocation28_spill] sm:$0xff] %v4197_v47  ;;  %v2309_v47 = vsel %vm758_vm1, %v1925_v21, 0.0 }
 0x219   : > { %v4199_v41 = vpop.f32.mrf.mxu0 }
 0x21b   : > { %v4203_v15 = vpop.f32.mrf.mxu0 }
 0x21c   : > { %5041 = vst [vmem:[#allocation30_spill] sm:$0xff] %v4203_v15  ;;  %1958 = vadd.xlane.f32.xlu1 %v1957_v54  ;;  %v1501_v54 = vpop.f32.mrf.mxu1 }
 0x21d   : > { %v4206_v58 = vpop.f32.mrf.mxu0 }
 0x21e   : > { %5042 = vst [vmem:[#allocation31_spill] sm:$0xff] %v4206_v58 }
 0x21f   : > { %v4213_v53 = vpop.f32.mrf.mxu0 }
 0x220   : > { %5044 = vst [vmem:[#allocation33_spill] sm:$0xff] %v4213_v53  ;;  %2310 = vadd.xlane.f32.xlu1 %v2309_v47  ;;  %v1553_v53 = vadd.f32 %v4120_v45, %v4060_v48  ;;  %v1862_v47 = vsub.f32 %v1832_v22, %v4098_v28  ;;  %v1756_v45 = vpop.permute.xlu1 %1755 }
 0x221   : > { %v4218_v15 = vpop.f32.mrf.mxu0 }
 0x222   : > { %5045 = vst [vmem:[#allocation34_spill] sm:$0xff] %v4218_v15  ;;  %v1894_v56 = vsub.f32 %v1862_v47, %v1553_v53 }
 0x223   : > { %v1614_v58 = vpop.f32.mrf.mxu0 }
 0x224   : > { %v1615_v24 = vadd.f32 %v1614_v58, %v1501_v54  ;;  %v1926_v3 = vmul.f32 %v1894_v56, %v1894_v56  ;;  %v1800_v58 = vsel %vm758_vm1, %v3290_v11, %v4022_v40  ;;  %v1555_v40 = vadd.f32 %v4124_v23, %v4062_v35  ;;  %v1758_v35 = vpop.permute.xlu0 %1757  ;;  %v1760_v63 = vpop.permute.xlu1 %1759 }
 0x225   : > { %v1816_v48 = vsel %vm1370_vm2, %v1800_v58, %v4056_v34  ;;  %v1817_v56 = vsel %vm1370_vm2, %v1801_v38, %v4042_v60  ;;  %v1563_v23 = vadd.f32 %v4137_v16, %v4072_v8  ;;  %v1865_v60 = vsub.f32 %v3290_v11, %v4102_v20 }
 0x226   : > { %v4225_v21 = vsub.f32 %v1887_v57, %v1615_v24  ;;  %v1960_v15 = vsel %vm758_vm1, %v1926_v3, 0.0  ;;  %v1833_v53 = vsel %vm1829_vm3, %v1816_v48, %v1756_v45  ;;  %v1863_v57 = vsub.f32 %v3289_v0, %v4102_v20 }
 0x227   : > { %v1834_v0 = vsel %vm1829_vm3, %v1817_v56, %v1758_v35  ;;  %v1897_v45 = vsub.f32 %v1865_v60, %v1559_v10  ;;  %v1867_v8 = vsub.f32 %v3291_v44, %v4102_v20  ;;  %v1567_v11 = vadd.f32 %v4148_v46, %v4080_v6 }
 0x228   : > { %5046 = vst [vmem:[#allocation35_spill] sm:$0xff] %v4225_v21  ;;  %v1895_v54 = vsub.f32 %v1863_v57, %v1555_v40  ;;  %v3292_v40 = vld [vmem:[%s3645_s18 + $0x28] sm:$0xff]  ;;  %v1762_v6 = vpop.permute.xlu0 %1761  ;;  %v1573_v38 = vadd.f32 %v4156_v13, %v4089_v36 }
 0x229   : > { %v1802_v5 = vsel %vm758_vm1, %v3292_v40, %v4026_v30 }
 0x22a   : > { %v1927_v34 = vmul.f32 %v1895_v54, %v1895_v54 }
 0x22c   : > { %v2312_v22 = vsel %vm758_vm1, %v1927_v34, 0.0 }
 0x231   : > { %2022 = vrot.lane.b32.xlu1 %v1926_v3, %s3368_s19 }
 0x232   : > { %1961 = vadd.xlane.f32.xlu0 %v1960_v15  ;;  %v1864_v15 = vsub.f32 %v1833_v53, %v4098_v28  ;;  %v1929_v53 = vmul.f32 %v1897_v45, %v1897_v45  ;;  %v3294_v45 = vld [vmem:[%s3645_s18 + $0x38] sm:$0xff] }
 0x234   : > { %v1896_v24 = vsub.f32 %v1864_v15, %v1557_v1  ;;  %v1565_v1 = vadd.f32 %v4144_v18, %v4074_v27  ;;  %v2315_v16 = vsel %vm758_vm1, %v1929_v53, 0.0  ;;  %v1818_v27 = vsel %vm1370_vm2, %v1802_v5, %v4066_v39 }
 0x235   : > { %2118 = vrot.lane.b32.xlu1 %v1926_v3, %s3367_s13  ;;  %v1835_v18 = vsel %vm1829_vm3, %v1818_v27, %v1760_v63  ;;  %v1577_v53 = vadd.f32 %v4163_v59, %v4105_v33  ;;  %v1766_v59 = vpop.permute.xlu0 %1765 }
 0x236   : > { %v1928_v7 = vmul.f32 %v1896_v24, %v1896_v24  ;;  %v1899_v15 = vsub.f32 %v1867_v8, %v1565_v1  ;;  %v1868_v57 = vsub.f32 %v1835_v18, %v4098_v28 }
 0x238   : > { %v1963_v47 = vsel %vm758_vm1, %v1928_v7, 0.0  ;;  %v1931_v24 = vmul.f32 %v1899_v15, %v1899_v15  ;;  %v1900_v54 = vsub.f32 %v1868_v57, %v1567_v11 }
 0x239   : > { %2214 = vrot.lane.b32.xlu1 %v1926_v3, %s3366_s26  ;;  %v1866_v3 = vsub.f32 %v1834_v0, %v4098_v28 }
 0x23a   : > { %v1932_v34 = vmul.f32 %v1900_v54, %v1900_v54 }
 0x23b   : > { %v1898_v58 = vsub.f32 %v1866_v3, %v1563_v23 }
 0x23c   : > { %v1969_v30 = vsel %vm758_vm1, %v1932_v34, 0.0 }
 0x23d   : > { %v1930_v48 = vmul.f32 %v1898_v58, %v1898_v58  ;;  %v1575_v58 = vadd.f32 %v4161_v2, %v4094_v17 }
 0x248   : > { %2216 = vrot.lane.b32.xlu0 %v1928_v7, %s3366_s26 }
 0x25d   : > { %2313 = vadd.xlane.f32.xlu1 %v2312_v22  ;;  %v1966_v22 = vsel %vm758_vm1, %v1930_v48, 0.0 }
 0x267   : > { %1964 = vadd.xlane.f32.xlu0 %v1963_v47  ;;  %v3293_v47 = vld [vmem:[%s3645_s18 + $0x30] sm:$0xff] }
 0x268   : > { %v1803_v39 = vsel %vm758_vm1, %v3293_v47, %v4016_v29  ;;  %v1569_v29 = vadd.f32 %v4152_v25, %v4084_v9  ;;  %v1871_v13 = vsub.f32 %v3293_v47, %v4102_v20  ;;  %v1804_v25 = vsel %vm758_vm1, %v3294_v45, %v4030_v19  ;;  %v1764_v9 = vpop.permute.xlu1 %1763 }
 0x269   : > { %v1819_v46 = vsel %vm1370_vm2, %v1803_v39, %v4046_v32  ;;  %v1869_v32 = vsub.f32 %v3292_v40, %v4102_v20  ;;  %v1820_v2 = vsel %vm1370_vm2, %v1804_v25, %v4076_v52  ;;  %v1583_v40 = vadd.f32 %v4169_v51, %v4114_v37 }
 0x26a   : > { %v1836_v44 = vsel %vm1829_vm3, %v1819_v46, %v1762_v6  ;;  %v1837_v17 = vsel %vm1829_vm3, %v1820_v2, %v1764_v9  ;;  %v1579_v51 = vadd.f32 %v4167_v42, %v4112_v62  ;;  %v1873_v37 = vsub.f32 %v3294_v45, %v4102_v20 }
 0x26b   : > { %v1870_v56 = vsub.f32 %v1836_v44, %v4098_v28  ;;  %v1901_v23 = vsub.f32 %v1869_v32, %v1569_v29  ;;  %v1872_v1 = vsub.f32 %v1837_v17, %v4098_v28  ;;  %v1585_v46 = vadd.f32 %v4173_v43, %v4122_v50  ;;  %v4365_v43 = vld [vmem:[%s3645_s18 + $0x48] sm:$0xff] }
 0x26c   : > { %v1768_v27 = vpop.permute.xlu1 %1767 }
 0x26d   : > { %v1902_v35 = vsub.f32 %v1870_v56, %v1573_v38  ;;  %v1933_v3 = vmul.f32 %v1901_v23, %v1901_v23  ;;  %v1904_v8 = vsub.f32 %v1872_v1, %v1577_v53  ;;  %v1806_v23 = vsel %vm758_vm1, %v4365_v43, %v4034_v55 }
 0x26e   : > { %2024 = vrot.lane.b32.xlu1 %v1928_v7, %s3368_s19 }
 0x26f   : > { %v1934_v0 = vmul.f32 %v1902_v35, %v1902_v35  ;;  %v2321_v36 = vsel %vm758_vm1, %v1933_v3, 0.0 }
 0x270   : > { %v4326_v18 = vpop.permute.xlu1 %1771 }
 0x271   : > { %v1972_v15 = vsel %vm758_vm1, %v1934_v0, 0.0 }
 0x272   : > { %2120 = vrot.lane.b32.xlu1 %v1928_v7, %s3367_s13  ;;  %v2318_v7 = vsel %vm758_vm1, %v1931_v24, 0.0  ;;  %v3295_v24 = vld [vmem:[%s3645_s18 + $0x40] sm:$0xff] }
 0x273   : > { %v1805_v52 = vsel %vm758_vm1, %v3295_v24, %v4020_v12  ;;  %v1875_v6 = vsub.f32 %v3295_v24, %v4102_v20 }
 0x274   : > { %v1821_v33 = vsel %vm1370_vm2, %v1805_v52, %v4050_v61  ;;  %v4329_v11 = vpop.permute.xlu1 %1775  ;;  %v4332_v61 = vpop.permute.xlu0 %1769 }
 0x275   : > { %v1907_v44 = vsub.f32 %v1875_v6, %v1585_v46  ;;  %v5051_v6 = vld [vmem:[#allocation18_spill] sm:$0xff] }
 0x277   : > { %v1939_v35 = vmul.f32 %v1907_v44, %v1907_v44 }
 0x278   : > { %v4334_v57 = vpop.permute.xlu1 %1779 }
 0x279   : > { %v2330_v29 = vsel %vm758_vm1, %v1939_v35, 0.0 }
 0x27c   : > { %v4339_v54 = vpop.permute.xlu1 %2018 }
 0x27d   : > { %2026 = vrot.lane.b32.xlu0 %v1930_v48, %s3368_s19 }
 0x281   : > { %2122 = vrot.lane.b32.xlu0 %v1930_v48, %s3367_s13 }
 0x296   : > { %2316 = vadd.xlane.f32.xlu1 %v2315_v16  ;;  %v1936_v16 = vmul.f32 %v1904_v8, %v1904_v8 }
 0x298   : > { %v1975_v19 = vsel %vm758_vm1, %v1936_v16, 0.0 }
 0x2a0   : > { %2319 = vadd.xlane.f32.xlu0 %v2318_v7  ;;  %v1838_v7 = vsel %vm1829_vm3, %v1821_v33, %v1766_v59 }
 0x2a1   : > { %v1874_v5 = vsub.f32 %v1838_v7, %v4098_v28 }
 0x2a3   : > { %v1906_v63 = vsub.f32 %v1874_v5, %v1583_v40  ;;  %v4417_v5 = vld [vmem:[%s3645_s18 + $0x50] sm:$0xff] }
 0x2a5   : > { %v1938_v12 = vmul.f32 %v1906_v63, %v1906_v63 }
 0x2a7   : > { %2218 = vrot.lane.b32.xlu1 %v1930_v48, %s3366_s26  ;;  %v1903_v48 = vsub.f32 %v1871_v13, %v1575_v58  ;;  %v1822_v58 = vsel %vm1370_vm2, %v1806_v23, %v4092_v49 }
 0x2a9   : > { %v1935_v10 = vmul.f32 %v1903_v48, %v1903_v48  ;;  %v1587_v48 = vadd.f32 %v4176_v14, %v4132_v31 }
 0x2ab   : > { %v2324_v60 = vsel %vm758_vm1, %v1935_v10, 0.0 }
 0x2b6   : > { %2220 = vrot.lane.b32.xlu0 %v1932_v34, %s3366_s26 }
 0x2cb   : > { %1967 = vadd.xlane.f32.xlu1 %v1966_v22  ;;  %v1905_v22 = vsub.f32 %v1873_v37, %v1579_v51 }
 0x2cd   : > { %v1937_v47 = vmul.f32 %v1905_v22, %v1905_v22  ;;  %v5050_v22 = vlaneseq }
 0x2cf   : > { %v2327_v42 = vsel %vm758_vm1, %v1937_v47, 0.0  ;;  %v4430_v47 = vand.u32 127, %v5050_v22 }
 0x2d1   : > { %v2376_v44 = vadd.s32 4294967288, %v4430_v47  ;;  %v2411_v22 = vadd.s32 4294967248, %v4430_v47 }
 0x2d5   : > { %1970 = vadd.xlane.f32.xlu0 %v1969_v30  ;;  %v4343_v30 = vpop.permute.xlu1 %2114 }
 0x2d9   : > { %v4353_v38 = vpop.permute.xlu1 %2210 }
 0x2dc   : > { %2028 = vrot.lane.b32.xlu1 %v1932_v34, %s3368_s19 }
 0x2dd   : > { %v4355_v56 = vpop.xlane.xlu1 %1958 }
 0x2e0   : > { %2124 = vrot.lane.b32.xlu1 %v1932_v34, %s3367_s13  ;;  %v4341_v34 = vpop.permute.xlu0 %1773 }
 0x2e1   : > { %v4360_v32 = vpop.xlane.xlu1 %2310 }
 0x2e4   : > { %v4345_v39 = vpop.permute.xlu0 %1777 }
 0x2e5   : > { %v4370_v3 = vpop.permute.xlu1 %2022 }
 0x2e8   : > { %v4351_v62 = vpop.xlane.xlu0 %1955 }
 0x2e9   : > { %v4380_v10 = vpop.permute.xlu1 %2118 }
 0x2eb   : > { %2030 = vrot.lane.b32.xlu0 %v1934_v0, %s3368_s19 }
 0x2ed   : > { %v4387_v2 = vpop.permute.xlu1 %2214 }
 0x2ef   : > { %2126 = vrot.lane.b32.xlu0 %v1934_v0, %s3367_s13 }
 0x2f1   : > { %v4390_v49 = vpop.xlane.xlu1 %2313 }
 0x2f5   : > { %v4396_v31 = vpop.permute.xlu1 %2024 }
 0x2f9   : > { %v4400_v1 = vpop.permute.xlu1 %2120 }
 0x304   : > { %2322 = vadd.xlane.f32.xlu1 %v2321_v36  ;;  %v1839_v36 = vsel %vm1829_vm3, %v1822_v58, %v1768_v27  ;;  %v1807_v27 = vsel %vm758_vm1, %v4417_v5, %v4024_v4 }
 0x30e   : > { %2325 = vadd.xlane.f32.xlu0 %v2324_v60  ;;  %v1876_v60 = vsub.f32 %v1839_v36, %v4098_v28  ;;  %v2390_v36 = vadd.s32 4294967272, %v4430_v47 }
 0x310   : > { %v1908_v55 = vsub.f32 %v1876_v60, %v1587_v48  ;;  %v5053_v60 = vld [vmem:[#allocation5_spill] sm:$0xff] }
 0x312   : > { %v1940_v9 = vmul.f32 %v1908_v55, %v1908_v55  ;;  %v2404_v55 = vadd.s32 4294967256, %v4430_v47 }
 0x314   : > { %v1981_v59 = vsel %vm758_vm1, %v1940_v9, 0.0 }
 0x315   : > { %2222 = vrot.lane.b32.xlu1 %v1934_v0, %s3366_s26  ;;  %v4357_v0 = vpop.xlane.xlu0 %2307 }
 0x319   : > { %v4362_v50 = vpop.permute.xlu0 %2020 }
 0x31d   : > { %v4375_v13 = vpop.permute.xlu0 %2116 }
 0x31f   : > { %v4402_v8 = vpop.xlane.xlu1 %2316 }
 0x321   : > { %v4383_v45 = vpop.permute.xlu0 %2212 }
 0x323   : > { %v4409_v24 = vpop.permute.xlu1 %2218 }
 0x324   : > { %2224 = vrot.lane.b32.xlu0 %v1936_v16, %s3366_s26 }
 0x325   : > { %v4385_v25 = vpop.xlane.xlu0 %1961 }
 0x329   : > { %v4392_v17 = vpop.permute.xlu0 %2216 }
 0x32d   : > { %v4394_v53 = vpop.xlane.xlu0 %1964 }
 0x331   : > { %v4398_v14 = vpop.permute.xlu0 %2026 }
 0x339   : > { %1973 = vadd.xlane.f32.xlu1 %v1972_v15  ;;  %v1978_v15 = vsel %vm758_vm1, %v1938_v12, 0.0 }
 0x343   : > { %1976 = vadd.xlane.f32.xlu0 %v1975_v19 }
 0x34a   : > { %2032 = vrot.lane.b32.xlu1 %v1936_v16, %s3368_s19 }
 0x34e   : > { %2128 = vrot.lane.b32.xlu1 %v1936_v16, %s3367_s13  ;;  %v4404_v16 = vpop.permute.xlu0 %2122 }
 0x352   : > { %v4407_v19 = vpop.xlane.xlu0 %2319 }
 0x354   : > { %v1968_v52 = vpop.xlane.xlu1 %1967 }
 0x356   : > { %v4411_v33 = vpop.permute.xlu0 %2220 }
 0x357   : > { %5047 = vst [vmem:[#allocation36_spill] sm:$0xff] %v4411_v33 }
 0x358   : > { %v4414_v40 = vpop.permute.xlu1 %2028 }
 0x359   : > { %2034 = vrot.lane.b32.xlu0 %v1938_v12, %s3368_s19 }
 0x35c   : > { %v4427_v37 = vpop.permute.xlu1 %2124 }
 0x35d   : > { %2130 = vrot.lane.b32.xlu0 %v1938_v12, %s3367_s13 }
 0x35e   : > { %v1971_v7 = vpop.xlane.xlu0 %1970 }
 0x362   : > { %v4422_v63 = vpop.permute.xlu0 %2030 }
 0x363   : > { %5048 = vst [vmem:[#allocation37_spill] sm:$0xff] %v4422_v63 }
 0x366   : > { %v4441_v23 = vpop.permute.xlu0 %2126 }
 0x372   : > { %2328 = vadd.xlane.f32.xlu1 %v2327_v42  ;;  %v5052_v42 = vld [vmem:[#allocation24_spill] sm:$0xff] }
 0x373   : > { %v1593_v4 = vadd.f32 %v5052_v42, %v5051_v6  ;;  %v4470_v42 = vsub.s32 %v2404_v55, %v5053_v60  ;;  %v4486_v55 = vsub.s32 %v2411_v22, %v5053_v60 }
 0x37c   : > { %2331 = vadd.xlane.f32.xlu0 %v2330_v29  ;;  %v2383_v29 = vadd.s32 4294967280, %v4430_v47 }
 0x383   : > { %2226 = vrot.lane.b32.xlu1 %v1938_v12, %s3366_s26  ;;  %v5049_v12 = vld [vmem:[#allocation11_spill] sm:$0xff] }
 0x384   : > { %v1823_v51 = vsel %vm1370_vm2, %v1807_v27, %v5049_v12  ;;  %v4457_v27 = vsub.s32 %v4430_v47, %v5053_v60  ;;  %v4460_v12 = vsub.s32 %v2390_v36, %v5053_v60 }
 0x385   : > { %v1840_v46 = vsel %vm1829_vm3, %v1823_v51, %v4332_v61  ;;  %v4446_v61 = vsub.s32 %v2376_v44, %v5053_v60 }
 0x386   : > { %v1878_v58 = vsub.f32 %v1840_v46, %v4098_v28  ;;  %v2394_v36 = vrot.slane %v4394_v53, %v4460_v12 }
 0x387   : > { %v2380_v6 = vrot.slane %v4355_v56, %v4446_v61 }
 0x388   : > { %v1910_v48 = vsub.f32 %v1878_v58, %v1593_v4  ;;  %v2418_v4 = vadd.s32 4294967240, %v4430_v47  ;;  %v2375_v58 = vrot.slane %v4351_v62, %v4457_v27  ;;  %v2408_v62 = vrot.slane %v1971_v7, %v4470_v42 }
 0x38a   : > { %v4465_v46 = vmul.f32 %v1910_v48, %v1910_v48  ;;  %v4493_v21 = vsub.s32 %v2418_v4, %v5053_v60 }
 0x38d   : > { %v4438_v35 = vpop.xlane.xlu1 %2322 }
 0x391   : > { %v4462_v51 = vpop.permute.xlu1 %2222 }
 0x392   : > { %2228 = vrot.lane.b32.xlu0 %v1940_v9, %s3366_s26 }
 0x3a7   : > { %1979 = vadd.xlane.f32.xlu1 %v1978_v15  ;;  %v2397_v15 = vadd.s32 4294967264, %v4430_v47 }
 0x3b1   : > { %1982 = vadd.xlane.f32.xlu0 %v1981_v59  ;;  %v4453_v59 = vpop.xlane.xlu0 %2325 }
 0x3b8   : > { %2036 = vrot.lane.b32.xlu1 %v1940_v9, %s3368_s19 }
 0x3bc   : > { %2132 = vrot.lane.b32.xlu1 %v1940_v9, %s3367_s13  ;;  %v4450_v9 = vsub.s32 %v2383_v29, %v5053_v60  ;;  %v4476_v29 = vsub.s32 %v2397_v15, %v5053_v60  ;;  %v2382_v15 = vsel %vm2381_vm4, %v2380_v6, %v2375_v58  ;;  %v5055_v58 = vld [vmem:[#allocation17_spill] sm:$0xff] }
 0x3be   : > { %v2387_v44 = vrot.slane %v4385_v25, %v4450_v9  ;;  %v2401_v48 = vrot.slane %v1968_v52, %v4476_v29  ;;  %v4488_v25 = vpop.permute.xlu0 %2224 }
 0x3bf   : > { %5054 = vst [vmem:[#allocation11_spill] sm:$0xff] %v4488_v25  ;;  %v5058_v25 = vld [vmem:[#allocation26_spill] sm:$0xff] }
 0x3c0   : > { %v2389_v53 = vsel %vm2388_vm5, %v2387_v44, %v2382_v15  ;;  %v1877_v15 = vsub.f32 %v4365_v43, %v4102_v20 }
 0x3c1   : > { %v2396_v33 = vsel %vm2395_vm6, %v2394_v36, %v2389_v53  ;;  %v5056_v36 = vld [vmem:[#allocation23_spill] sm:$0xff] }
 0x3c2   : > { %v1974_v56 = vpop.xlane.xlu1 %1973  ;;  %v2403_v52 = vsel %vm2402_vm8, %v2401_v48, %v2396_v33  ;;  %v5057_v53 = vld [vmem:[#allocation19_spill] sm:$0xff] }
 0x3c3   : > { %v2415_v63 = vrot.slane %v1974_v56, %v4486_v55  ;;  %v2410_v7 = vsel %vm2409_vm7, %v2408_v62, %v2403_v52  ;;  %v1589_v56 = vadd.f32 %v5056_v36, %v5055_v58  ;;  %v1595_v62 = vadd.f32 %v5058_v25, %v5057_v53  ;;  %v5059_v58 = vld [vmem:[#allocation8_spill] sm:$0xff] }
 0x3c4   : > { %v1879_v52 = vsub.f32 %v4417_v5, %v4102_v20  ;;  %v5060_v5 = vld [vmem:[#allocation14_spill] sm:$0xff] }
 0x3c5   : > { %v2417_v4 = vsel %vm2416_vm10, %v2415_v63, %v2410_v7  ;;  %v1909_v33 = vsub.f32 %v1877_v15, %v1589_v56  ;;  %v2793_v56 = vrot.slane %v4360_v32, %v4446_v61 }
 0x3c6   : > { %v1911_v63 = vsub.f32 %v1879_v52, %v1595_v62  ;;  %v4523_v36 = vpop.permute.xlu1 %2032  ;;  %v2789_v62 = vrot.slane %v4357_v0, %v4457_v27  ;;  %v2803_v52 = vrot.slane %v4402_v8, %v4460_v12  ;;  %v2818_v0 = vrot.slane %v4453_v59, %v4486_v55 }
 0x3c7   : > { %2038 = vrot.lane.b32.xlu0 %v4465_v46, %s3368_s19  ;;  %v1941_v48 = vmul.f32 %v1909_v33, %v1909_v33  ;;  %v2798_v33 = vrot.slane %v4390_v49, %v4450_v9  ;;  %v2813_v49 = vrot.slane %v4438_v35, %v4470_v42  ;;  %v2425_v59 = vadd.s32 4294967232, %v4430_v47 }
 0x3c8   : > { %v1943_v7 = vmul.f32 %v1911_v63, %v1911_v63 }
 0x3ca   : > { %v4543_v63 = vpop.permute.xlu1 %2128 }
 0x3cb   : > { %2134 = vrot.lane.b32.xlu0 %v4465_v46, %s3367_s13 }
 0x3cc   : > { %v1977_v22 = vpop.xlane.xlu0 %1976 }
 0x3cd   : > { %v2422_v6 = vrot.slane %v1977_v22, %v4493_v21  ;;  %v2333_v22 = vsel %vm758_vm1, %v1941_v48, 0.0  ;;  %v5061_v48 = vld [vmem:[#allocation20_spill] sm:$0xff] }
 0x3ce   : > { %v1597_v53 = vadd.f32 %v4193_v26, %v5061_v48 }
 0x3cf   : > { %v4505_v44 = vsel %vm2423_vm9, %v2422_v6, %v2417_v4  ;;  %v2336_v6 = vsel %vm758_vm1, %v1943_v7, 0.0  ;;  %v4518_v4 = vld [vmem:[%s3645_s18 + $0x58] sm:$0xff] }
 0x3d0   : > { %v1808_v43 = vsel %vm758_vm1, %v4518_v4, %v5059_v58 }
 0x3d1   : > { %v1824_v25 = vsel %vm1370_vm2, %v1808_v43, %v5060_v5 }
 0x3d2   : > { %v1841_v15 = vsel %vm1829_vm3, %v1824_v25, %v4326_v18  ;;  %v2794_v18 = vsel %vm2381_vm4, %v2793_v56, %v2789_v62 }
 0x3d3   : > { %v1880_v32 = vsub.f32 %v1841_v15, %v4098_v28  ;;  %v2799_v26 = vsel %vm2388_vm5, %v2798_v33, %v2794_v18  ;;  %v4565_v33 = vsub.s32 %v2425_v59, %v5053_v60  ;;  %v5062_v18 = vld [vmem:[#allocation6_spill] sm:$0xff] }
 0x3d4   : > { %v2804_v8 = vsel %vm2395_vm6, %v2803_v52, %v2799_v26  ;;  %v1984_v52 = vsel %vm758_vm1, %v4465_v46, 0.0  ;;  %v5063_v26 = vld [vmem:[#allocation12_spill] sm:$0xff] }
 0x3d5   : > { %v1912_v7 = vsub.f32 %v1880_v32, %v1597_v53  ;;  %v3299_v32 = vld [vmem:[%s3645_s18 + $0x60] sm:$0xff] }
 0x3d7   : > { %v1944_v25 = vmul.f32 %v1912_v7, %v1912_v7 }
 0x3e0   : > { %2334 = vadd.xlane.f32.xlu1 %v2333_v22  ;;  %v2808_v22 = vrot.slane %v4407_v19, %v4476_v29  ;;  %v4554_v19 = vpop.permute.xlu0 %2034 }
 0x3e4   : > { %v4562_v15 = vpop.permute.xlu0 %2130 }
 0x3ea   : > { %2337 = vadd.xlane.f32.xlu0 %v2336_v6  ;;  %v2809_v6 = vsel %vm2402_vm8, %v2808_v22, %v2804_v8  ;;  %v1987_v22 = vsel %vm758_vm1, %v1944_v25, 0.0  ;;  %v5064_v8 = vld [vmem:[#allocation22_spill] sm:$0xff] }
 0x3eb   : > { %v2814_v43 = vsel %vm2409_vm7, %v2813_v49, %v2809_v6  ;;  %v1809_v49 = vsel %vm758_vm1, %v3299_v32, %v5062_v18 }
 0x3ec   : > { %v2819_v35 = vsel %vm2416_vm10, %v2818_v0, %v2814_v43  ;;  %v1825_v0 = vsel %vm1370_vm2, %v1809_v49, %v5063_v26  ;;  %v1881_v49 = vsub.f32 %v4518_v4, %v4102_v20 }
 0x3ed   : > { %v1842_v7 = vsel %vm1829_vm3, %v1825_v0, %v4341_v34 }
 0x3f1   : > { %2230 = vrot.lane.b32.xlu1 %v4465_v46, %s3366_s26  ;;  %v1603_v46 = vadd.f32 %v4199_v41, %v5064_v8  ;;  %v5069_v8 = vld [vmem:[#allocation30_spill] sm:$0xff] }
 0x3fb   : > { %v2329_v58 = vpop.xlane.xlu1 %2328 }
 0x3fc   : > { %v2823_v5 = vrot.slane %v2329_v58, %v4493_v21  ;;  %v1882_v58 = vsub.f32 %v1842_v7, %v4098_v28  ;;  %v5068_v7 = vld [vmem:[#allocation25_spill] sm:$0xff] }
 0x3fe   : > { %v2824_v56 = vsel %vm2423_vm9, %v2823_v5, %v2819_v35  ;;  %v1914_v43 = vsub.f32 %v1882_v58, %v1603_v46  ;;  %v1605_v46 = vadd.f32 %v5069_v8, %v5068_v7  ;;  %v1883_v58 = vsub.f32 %v3299_v32, %v4102_v20 }
 0x3ff   : > { %v4583_v6 = vpop.permute.xlu1 %2226 }
 0x400   : > { %2232 = vrot.lane.b32.xlu0 %v1944_v25, %s3366_s26 }
 0x405   : > { %v2332_v48 = vpop.xlane.xlu0 %2331 }
 0x406   : > { %v2828_v53 = vrot.slane %v2332_v48, %v4565_v33  ;;  %v2432_v48 = vadd.s32 4294967224, %v4430_v47 }
 0x408   : > { %v2829_v62 = vsel %vm2430_vm11, %v2828_v53, %v2824_v56  ;;  %v1946_v56 = vmul.f32 %v1914_v43, %v1914_v43  ;;  %v4594_v41 = vsub.s32 %v2432_v48, %v5053_v60  ;;  %v3300_v48 = vld [vmem:[%s3645_s18 + $0x68] sm:$0xff] }
 0x409   : > { %v4591_v34 = vpop.permute.xlu0 %2228 }
 0x40a   : > { %5065 = vst [vmem:[#allocation18_spill] sm:$0xff] %v4594_v41 }
 0x415   : > { %1985 = vadd.xlane.f32.xlu1 %v1984_v52 }
 0x41f   : > { %1988 = vadd.xlane.f32.xlu0 %v1987_v22  ;;  %v5066_v22 = vld [vmem:[#allocation21_spill] sm:$0xff] }
 0x426   : > { %2040 = vrot.lane.b32.xlu1 %v1944_v25, %s3368_s19 }
 0x42a   : > { %2136 = vrot.lane.b32.xlu1 %v1944_v25, %s3367_s13 }
 0x430   : > { %v1980_v5 = vpop.xlane.xlu1 %1979 }
 0x431   : > { %v2429_v35 = vrot.slane %v1980_v5, %v4565_v33  ;;  %v1915_v5 = vsub.f32 %v1883_v58, %v1605_v46 }
 0x433   : > { %v2431_v59 = vsel %vm2430_vm11, %v2429_v35, %v4505_v44  ;;  %v5067_v44 = vld [vmem:[#allocation28_spill] sm:$0xff]  ;;  %v1947_v35 = vmul.f32 %v1915_v5, %v1915_v5 }
 0x434   : > { %v1599_v18 = vadd.f32 %v5067_v44, %v5066_v22  ;;  %v4611_v4 = vpop.permute.xlu1 %2036  ;;  %v5071_v22 = vld [vmem:[#allocation15_spill] sm:$0xff] }
 0x435   : > { %2042 = vrot.lane.b32.xlu0 %v1946_v56, %s3368_s19 }
 0x436   : > { %v1913_v26 = vsub.f32 %v1881_v49, %v1599_v18  ;;  %v5072_v18 = vld [vmem:[#allocation27_spill] sm:$0xff] }
 0x437   : > { %v5073_v49 = vld [vmem:[#allocation31_spill] sm:$0xff] }
 0x438   : > { %v1945_v0 = vmul.f32 %v1913_v26, %v1913_v26  ;;  %v1607_v26 = vadd.f32 %v5073_v49, %v5072_v18  ;;  %v3301_v18 = vld [vmem:[%s3645_s18 + $0x70] sm:$0xff]  ;;  %v5075_v49 = vld [vmem:[#allocation7_spill] sm:$0xff] }
 0x439   : > { %2138 = vrot.lane.b32.xlu0 %v1946_v56, %s3367_s13 }
 0x43a   : > { %v1983_v25 = vpop.xlane.xlu0 %1982  ;;  %v2339_v43 = vsel %vm758_vm1, %v1945_v0, 0.0  ;;  %v4620_v0 = vpop.permute.xlu1 %2132 }
 0x43b   : > { %v2436_v53 = vrot.slane %v1983_v25, %v4594_v41  ;;  %v5070_v25 = vld [vmem:[#allocation9_spill] sm:$0xff] }
 0x43d   : > { %v2438_v52 = vsel %vm2437_vm12, %v2436_v53, %v2431_v59  ;;  %v2342_v59 = vsel %vm758_vm1, %v1947_v35, 0.0  ;;  %v1810_v53 = vsel %vm758_vm1, %v3300_v48, %v5070_v25 }
 0x43e   : > { %v1826_v44 = vsel %vm1370_vm2, %v1810_v53, %v5071_v22  ;;  %v4623_v46 = vpop.permute.xlu0 %2038 }
 0x43f   : > { %v1843_v32 = vsel %vm1829_vm3, %v1826_v44, %v4329_v11 }
 0x440   : > { %v1884_v7 = vsub.f32 %v1843_v32, %v4098_v28  ;;  %v1990_v32 = vsel %vm758_vm1, %v1946_v56, 0.0 }
 0x442   : > { %v1916_v8 = vsub.f32 %v1884_v7, %v1607_v26  ;;  %v4629_v11 = vpop.permute.xlu0 %2134  ;;  %v1811_v26 = vsel %vm758_vm1, %v3301_v18, %v5075_v49  ;;  %v5076_v7 = vld [vmem:[#allocation13_spill] sm:$0xff] }
 0x444   : > { %v1948_v5 = vmul.f32 %v1916_v8, %v1916_v8  ;;  %v1827_v8 = vsel %vm1370_vm2, %v1811_v26, %v5076_v7  ;;  %v2446_v26 = vadd.s32 4294967208, %v4430_v47 }
 0x44e   : > { %2340 = vadd.xlane.f32.xlu1 %v2339_v43 }
 0x458   : > { %2343 = vadd.xlane.f32.xlu0 %v2342_v59  ;;  %v2439_v59 = vadd.s32 4294967216, %v4430_v47 }
 0x45a   : > { %v4632_v25 = vsub.s32 %v2439_v59, %v5053_v60 }
 0x45c   : > { %5074 = vst [vmem:[#allocation24_spill] sm:$0xff] %v4632_v25 }
 0x45f   : > { %2234 = vrot.lane.b32.xlu1 %v1946_v56, %s3366_s26  ;;  %v5078_v56 = vld [vmem:[#allocation34_spill] sm:$0xff] }
 0x469   : > { %v2335_v58 = vpop.xlane.xlu1 %2334 }
 0x46a   : > { %v2833_v43 = vrot.slane %v2335_v58, %v4594_v41  ;;  %v1844_v58 = vsel %vm1829_vm3, %v1827_v8, %v4345_v39  ;;  %v5082_v41 = vld [vmem:[#allocation16_spill] sm:$0xff] }
 0x46c   : > { %v2834_v35 = vsel %vm2437_vm12, %v2833_v43, %v2829_v62  ;;  %v1993_v62 = vsel %vm758_vm1, %v1948_v5, 0.0  ;;  %v5077_v43 = vld [vmem:[#allocation32_spill] sm:$0xff] }
 0x46d   : > { %v4651_v59 = vpop.permute.xlu1 %2230 }
 0x46e   : > { %2236 = vrot.lane.b32.xlu0 %v1948_v5, %s3366_s26 }
 0x473   : > { %v2338_v53 = vpop.xlane.xlu0 %2337 }
 0x474   : > { %v2838_v22 = vrot.slane %v2338_v53, %v4632_v25  ;;  %v1886_v53 = vsub.f32 %v1844_v58, %v4098_v28 }
 0x476   : > { %v4636_v44 = vsel %vm2444_vm13, %v2838_v22, %v2834_v35  ;;  %v1613_v35 = vadd.f32 %v5078_v56, %v5077_v43  ;;  %v5080_v43 = vld [vmem:[#allocation33_spill] sm:$0xff] }
 0x477   : > { %v4658_v39 = vpop.permute.xlu0 %2232 }
 0x478   : > { %v1918_v22 = vsub.f32 %v1886_v53, %v1613_v35  ;;  %v1885_v35 = vsub.f32 %v3300_v48, %v4102_v20 }
 0x47a   : > { %v1950_v18 = vmul.f32 %v1918_v22, %v1918_v22  ;;  %v4673_v22 = vld [vmem:[%s3645_s18 + $0x78] sm:$0xff]  ;;  %s329_s18 = sand.u32 1, %s3355_s28  }
 0x483   : > { %1991 = vadd.xlane.f32.xlu1 %v1990_v32 }
 0x48d   : > { %1994 = vadd.xlane.f32.xlu0 %v1993_v62 }
 0x494   : > { %2044 = vrot.lane.b32.xlu1 %v1948_v5, %s3368_s19 }
 0x498   : > { %2140 = vrot.lane.b32.xlu1 %v1948_v5, %s3367_s13  ;;  %v4661_v5 = vsub.s32 %v2446_v26, %v5053_v60 }
 0x49e   : > { %v1986_v32 = vpop.xlane.xlu1 %1985 }
 0x49f   : > { %v2443_v62 = vrot.slane %v1986_v32, %v4632_v25  ;;  %v5081_v32 = vld [vmem:[#allocation10_spill] sm:$0xff] }
 0x4a1   : > { %v2445_v49 = vsel %vm2444_vm13, %v2443_v62, %v2438_v52  ;;  %v5079_v52 = vld [vmem:[#allocation29_spill] sm:$0xff]  ;;  %v1812_v62 = vsel %vm758_vm1, %v4673_v22, %v5081_v32 }
 0x4a2   : > { %v1609_v56 = vadd.f32 %v5080_v43, %v5079_v52  ;;  %v1503_v52 = vpop.f32.mrf.mxu1 }
 0x4a3   : > { %2046 = vrot.lane.b32.xlu0 %v1950_v18, %s3368_s19 }
 0x4a4   : > { %v1917_v53 = vsub.f32 %v1885_v35, %v1609_v56  ;;  %v1996_v56 = vsel %vm758_vm1, %v1950_v18, 0.0 }
 0x4a6   : > { %v1949_v26 = vmul.f32 %v1917_v53, %v1917_v53 }
 0x4a7   : > { %2142 = vrot.lane.b32.xlu0 %v1950_v18, %s3367_s13 }
 0x4a8   : > { %v1989_v7 = vpop.xlane.xlu0 %1988 }
 0x4a9   : > { %v2450_v8 = vrot.slane %v1989_v7, %v4661_v5  ;;  %v1828_v7 = vsel %vm1370_vm2, %v1812_v62, %v5082_v41  ;;  %v4686_v41 = vpop.permute.xlu1 %2040  ;;  %v2066_v62 = vsel %vm758_vm1, %v4339_v54, 0.0  ;;  %vm2472_vm2 = vcmask 982912  }
 0x4aa   : > { %v1845_v25 = vsel %vm1829_vm3, %v1828_v7, %v4334_v57  ;;  %v2162_v57 = vsel %vm758_vm1, %v4343_v30, 0.0  ;;  %v2072_v7 = vsel %vm758_vm1, %v4370_v3, 0.0  ;;  %v2075_v3 = vsel %vm758_vm1, %v4396_v31, 0.0 }
 0x4ab   : > { %v4666_v58 = vsel %vm2451_vm14, %v2450_v8, %v2445_v49  ;;  %2238 = vrot.lane.b32.xlu0 %v1950_v18, %s3366_s26  ;;  %v1616_v49 = vpop.f32.mrf.mxu0  ;;  %v2345_v8 = vsel %vm758_vm1, %v1949_v26, 0.0  ;;  %v1888_v43 = vsub.f32 %v1845_v25, %v4098_v28  ;;  %v2261_v25 = vsel %vm758_vm1, %v4383_v45, 0.0 }
 0x4ac   : > { %v1617_v48 = vadd.f32 %v1616_v49, %v1503_v52  ;;  %v4698_v18 = vpop.permute.xlu0 %2042  ;;  %v2453_v49 = vadd.s32 4294967200, %v4430_v47  ;;  %v2168_v45 = vsel %vm758_vm1, %v4380_v10, 0.0  ;;  %v2267_v10 = vsel %vm758_vm1, %v4392_v17, 0.0 }
 0x4ad   : > { %v4693_v28 = vpop.permute.xlu1 %2136  ;;  %v2081_v31 = vsel %vm758_vm1, %v4414_v40, 0.0  ;;  %v2258_v17 = vsel %vm758_vm1, %v4353_v38, 0.0  ;;  %v2087_v40 = vsel %vm758_vm1, %v4523_v36, 0.0  ;;  %vm2479_vm3 = vcmask 1048512  }
 0x4ae   : > { %v1920_v35 = vsub.f32 %v1888_v43, %v1617_v48  ;;  %v4712_v52 = vsub.s32 %v2453_v49, %v5053_v60  ;;  %v2099_v49 = vsel %vm758_vm1, %v4686_v41, 0.0 }
 0x4b0   : > { %v1952_v32 = vmul.f32 %v1920_v35, %v1920_v35  ;;  %v2270_v35 = vsel %vm758_vm1, %v4409_v24, 0.0  ;;  %v2069_v24 = vsel %vm758_vm1, %v4362_v50, 0.0  ;;  %v2282_v50 = vsel %vm758_vm1, %v4583_v6, 0.0 }
 0x4b1   : > { %v2174_v6 = vsel %vm758_vm1, %v4404_v16, 0.0 }
 0x4b2   : > { %v1999_v53 = vsel %vm758_vm1, %v1952_v32, 0.0 }
 0x4bc   : > { %2346 = vadd.xlane.f32.xlu1 %v2345_v8  ;;  %v4707_v8 = vpop.permute.xlu0 %2138 }
 0x4c0   : > { %1997 = vadd.xlane.f32.xlu1 %v1996_v56  ;;  %v2171_v56 = vsel %vm758_vm1, %v4400_v1, 0.0  ;;  %v2180_v1 = vsel %vm758_vm1, %v4441_v23, 0.0  ;;  %v2186_v23 = vsel %vm758_vm1, %v4562_v15, 0.0 }
 0x4ca   : > { %2000 = vadd.xlane.f32.xlu0 %v1999_v53  ;;  %v2276_v53 = vsel %vm758_vm1, %v4462_v51, 0.0  ;;  %v2264_v51 = vsel %vm758_vm1, %v4387_v2, 0.0  ;;  %v2460_v2 = vadd.s32 4294967192, %v4430_v47 }
 0x4ce   : > { %2067 = vadd.xlane.f32.xlu0 %v2066_v62  ;;  %v2078_v62 = vsel %vm758_vm1, %v4398_v14, 0.0 }
 0x4d1   : > { %2048 = vrot.lane.b32.xlu1 %v1952_v32, %s3368_s19  ;;  %s2883_s19 = scalar_lea.sflag [#allocation3], %s329_s18 }
 0x4d2   : > { %2163 = vadd.xlane.f32.xlu0 %v2162_v57 }
 0x4d5   : > { %2144 = vrot.lane.b32.xlu1 %v1952_v32, %s3367_s13  ;;  %s3096_s13 = sshll.u32 %s3436_s9, 7  ;;  %s3369_s9 = smov [#allocation2]  }
 0x4d6   : > { %2262 = vadd.xlane.f32.xlu0 %v2261_v25  ;;  %v2192_v25 = vsel %vm758_vm1, %v4629_v11, 0.0  ;;  %s4959_s25 = scalar_lea.hbm %s5002_s8, %s3096_s13  ;;  %s3307_s17 = sshll.u32 %s3369_s9, 4  ;;  %s3308_s17 = int_to_ptr.vmem [resolvable:$false] %s3307_s17 }
 0x4d7   : > { %v2341_v26 = vpop.xlane.xlu1 %2340  ;;  %s3309_s22 = scalar_lea.vmem %s3308_s17, 256 }
 0x4d8   : > { %v2843_v54 = vrot.slane %v2341_v26, %v4661_v5  ;;  %v5083_v26 = vld [vmem:[#allocation36_spill] sm:$0xff] }
 0x4d9   : > { %2240 = vrot.lane.b32.xlu1 %v1952_v32, %s3366_s26  ;;  %v2177_v32 = vsel %vm758_vm1, %v4427_v37, 0.0  ;;  %v2165_v37 = vsel %vm758_vm1, %v4375_v13, 0.0  ;;  %v2093_v13 = vsel %vm758_vm1, %v4611_v4, 0.0  ;;  %v4761_v4 = vsub.s32 %v2460_v2, %v5053_v60  ;;  %s2983_s26 = sshll.u32 %s329_s18, 3 }
 0x4da   : > { %v2844_v30 = vsel %vm2451_vm14, %v2843_v54, %v4636_v44  ;;  %2073 = vadd.xlane.f32.xlu0 %v2072_v7  ;;  %v2273_v54 = vsel %vm758_vm1, %v5083_v26, 0.0  ;;  %s331_s21 = scalar_lea.vmem [#allocation2], %s2983_s26 }
 0x4db   : > { %v2235_v38 = vpop.permute.xlu1 %2234  ;;  %s2896_s12 = sshll.u32 %s331_s21, 4  ;;  %s2897_s12 = int_to_ptr.vmem [resolvable:$true] %s2896_s12 }
 0x4dc   : > { %s3303_s10 = scalar_lea.vmem %s2897_s12, 128  ;;  %p3310_p0 = scmp.lt.s32.totalorder %s2897_s12, %s3308_s17 }
 0x4dd   : > { %p3304_p11 = scmp.ne.s32.totalorder %s2897_s12, %s3303_s10  ;;  %p3311_p1 = scmp.lt.s32.totalorder %s3309_s22, %s3303_s10 }
 0x4de   : > { %2169 = vadd.xlane.f32.xlu0 %v2168_v45 }
 0x4df   : > { %p3305_p12 = pnand %p3304_p11, %p3453_p5  ;;  %p3312_p2 = por %p3311_p1, %p3310_p0 }
 0x4e1   : > { %v2344_v48 = vpop.xlane.xlu0 %2343  ;;  %p3306_p13 = pneg %p3305_p12 }
 0x4e2   : > { %v2848_v43 = vrot.slane %v2344_v48, %v4712_v52  ;;  %2076 = vadd.xlane.f32.xlu0 %v2075_v3  ;;  %v2183_v48 = vsel %vm758_vm1, %v4543_v63, 0.0 }
 0x4e3   : > { %p3313_p3 = pnand %p3312_p2, %p3306_p13 }
 0x4e4   : > { %v4718_v44 = vsel %vm2458_vm15, %v2848_v43, %v2844_v30  ;;  %v5084_v30 = vld [vmem:[#allocation37_spill] sm:$0xff]  ;;  %v5085_v43 = vld [vmem:[#allocation11_spill] sm:$0xff] }
 0x4e5   : > { %v2237_v14 = vpop.permute.xlu0 %2236  ;;  %v2084_v11 = vsel %vm758_vm1, %v5084_v30, 0.0 }
 0x4e6   : > { %2172 = vadd.xlane.f32.xlu0 %v2171_v56  ;;  %v2279_v56 = vsel %vm758_vm1, %v5085_v43, 0.0 }
 0x4ea   : > { %2268 = vadd.xlane.f32.xlu0 %v2267_v10  ;;  %v2294_v10 = vsel %vm758_vm1, %v2235_v38, 0.0 }
 0x4ee   : > { %2271 = vadd.xlane.f32.xlu0 %v2270_v35  ;;  %v2090_v35 = vsel %vm758_vm1, %v4554_v19, 0.0  ;;  %v2096_v19 = vsel %vm758_vm1, %v4623_v46, 0.0  ;;  %v2297_v46 = vsel %vm758_vm1, %v2237_v14, 0.0 }
 0x4f2   : > { %2082 = vadd.xlane.f32.xlu0 %v2081_v31 }
 0x4f6   : > { %2178 = vadd.xlane.f32.xlu0 %v2177_v32 }
 0x4fa   : > { %2181 = vadd.xlane.f32.xlu0 %v2180_v1 }
 0x4fd   : > { %2259 = vadd.xlane.f32.xlu1 %v2258_v17  ;;  %v2285_v17 = vsel %vm758_vm1, %v4591_v34, 0.0 }
 0x4fe   : > { %2277 = vadd.xlane.f32.xlu0 %v2276_v53 }
 0x501   : > { %2070 = vadd.xlane.f32.xlu1 %v2069_v24  ;;  %v2195_v24 = vsel %vm758_vm1, %v4693_v28, 0.0 }
 0x502   : > { %2088 = vadd.xlane.f32.xlu0 %v2087_v40  ;;  %v2102_v40 = vsel %vm758_vm1, %v4698_v18, 0.0 }
 0x505   : > { %2166 = vadd.xlane.f32.xlu1 %v2165_v37 }
 0x506   : > { %2187 = vadd.xlane.f32.xlu0 %v2186_v23  ;;  %v2467_v23 = vadd.s32 4294967184, %v4430_v47 }
 0x509   : > { %2265 = vadd.xlane.f32.xlu1 %v2264_v51  ;;  %v4802_v51 = vsub.s32 %v2467_v23, %v5053_v60 }
 0x50a   : > { %2283 = vadd.xlane.f32.xlu0 %v2282_v50 }
 0x50c   : > { %v1992_v36 = vpop.xlane.xlu1 %1991 }
 0x50d   : > { %v2457_v15 = vrot.slane %v1992_v36, %v4712_v52  ;;  %2079 = vadd.xlane.f32.xlu1 %v2078_v62  ;;  %v1618_v62 = vpop.f32.mrf.mxu0 }
 0x50e   : > { %2094 = vadd.xlane.f32.xlu0 %v2093_v13 }
 0x50f   : > { %v2459_v57 = vsel %vm2458_vm15, %v2457_v15, %v4666_v58  ;;  %v2288_v58 = vsel %vm758_vm1, %v4651_v59, 0.0  ;;  %v2198_v59 = vsel %vm758_vm1, %v4707_v8, 0.0  ;;  %v2189_v8 = vsel %vm758_vm1, %v4620_v0, 0.0 }
 0x510   : > { %v2045_v41 = vpop.permute.xlu1 %2044  ;;  %v2291_v0 = vsel %vm758_vm1, %v4658_v39, 0.0  ;;  %v2474_v15 = vadd.s32 4294967176, %v4430_v47 }
 0x511   : > { %2175 = vadd.xlane.f32.xlu1 %v2174_v6  ;;  %v2105_v63 = vsel %vm758_vm1, %v2045_v41, 0.0 }
 0x512   : > { %2193 = vadd.xlane.f32.xlu0 %v2192_v25  ;;  %v1889_v25 = vsub.f32 %v4673_v22, %v4102_v20 }
 0x514   : > { %v2141_v34 = vpop.permute.xlu1 %2140 }
 0x515   : > { %2274 = vadd.xlane.f32.xlu1 %v2273_v54  ;;  %v2201_v37 = vsel %vm758_vm1, %v2141_v34, 0.0  ;;  %v5086_v54 = vld [vmem:[#allocation35_spill] sm:$0xff] }
 0x516   : > { %v1995_v7 = vpop.xlane.xlu0 %1994  ;;  %2289 = vadd.xlane.f32.xlu0 %v2288_v58  ;;  %v1951_v58 = vmul.f32 %v5086_v54, %v5086_v54 }
 0x517   : > { %v2464_v16 = vrot.slane %v1995_v7, %v4761_v4 }
 0x519   : > { %v2466_v45 = vsel %vm2465_vm0, %v2464_v16, %v2459_v57  ;;  %2085 = vadd.xlane.f32.xlu1 %v2084_v11  ;;  %v1505_v57 = vpop.f32.mrf.mxu1 }
 0x51a   : > { %2100 = vadd.xlane.f32.xlu0 %v2099_v49  ;;  %v2047_v3 = vpop.permute.xlu0 %2046  ;;  %v1619_v6 = vadd.f32 %v1618_v62, %v1505_v57  ;;  %v2348_v49 = vsel %vm758_vm1, %v1951_v58, 0.0 }
 0x51b   : > { %v2108_v39 = vsel %vm758_vm1, %v2047_v3, 0.0 }
 0x51c   : > { %v1921_v7 = vsub.f32 %v1889_v25, %v1619_v6 }
 0x51d   : > { %2184 = vadd.xlane.f32.xlu1 %v2183_v48 }
 0x51e   : > { %2199 = vadd.xlane.f32.xlu0 %v2198_v59  ;;  %v2143_v31 = vpop.permute.xlu0 %2142  ;;  %v1953_v20 = vmul.f32 %v1921_v7, %v1921_v7 }
 0x51f   : > { %v2204_v32 = vsel %vm758_vm1, %v2143_v31, 0.0 }
 0x520   : > { %v2351_v48 = vsel %vm758_vm1, %v1953_v20, 0.0 }
 0x521   : > { %2280 = vadd.xlane.f32.xlu1 %v2279_v56 }
 0x522   : > { %2295 = vadd.xlane.f32.xlu0 %v2294_v10  ;;  %v2239_v1 = vpop.permute.xlu0 %2238 }
 0x523   : > { %v2300_v53 = vsel %vm758_vm1, %v2239_v1, 0.0 }
 0x525   : > { %2091 = vadd.xlane.f32.xlu1 %v2090_v35 }
 0x526   : > { %2106 = vadd.xlane.f32.xlu0 %v2105_v63 }
 0x529   : > { %2190 = vadd.xlane.f32.xlu1 %v2189_v8 }
 0x52a   : > { %2205 = vadd.xlane.f32.xlu0 %v2204_v32 }
 0x52d   : > { %2286 = vadd.xlane.f32.xlu1 %v2285_v17 }
 0x52e   : > { %2301 = vadd.xlane.f32.xlu0 %v2300_v53 }
 0x531   : > { %2097 = vadd.xlane.f32.xlu1 %v2096_v19 }
 0x535   : > { %2196 = vadd.xlane.f32.xlu1 %v2195_v24 }
 0x539   : > { %2292 = vadd.xlane.f32.xlu1 %v2291_v0 }
 0x53d   : > { %2103 = vadd.xlane.f32.xlu1 %v2102_v40 }
 0x541   : > { %2202 = vadd.xlane.f32.xlu1 %v2201_v37 }
 0x545   : > { %v2347_v38 = vpop.xlane.xlu1 %2346  ;;  %2298 = vadd.xlane.f32.xlu1 %v2297_v46 }
 0x546   : > { %v2853_v28 = vrot.slane %v2347_v38, %v4761_v4 }
 0x548   : > { %v4807_v18 = vsel %vm2465_vm0, %v2853_v28, %v4718_v44  ;;  %v4816_v44 = vsub.s32 %v2474_v15, %v5053_v60 }
 0x549   : > { %v1998_v50 = vpop.xlane.xlu1 %1997  ;;  %2109 = vadd.xlane.f32.xlu1 %v2108_v39 }
 0x54a   : > { %v2471_v36 = vrot.slane %v1998_v50, %v4802_v51 }
 0x54c   : > { %v2473_v13 = vsel %vm2472_vm2, %v2471_v36, %v2466_v45 }
 0x54d   : > { %v2049_v2 = vpop.permute.xlu1 %2048 }
 0x54e   : > { %v2111_v14 = vsel %vm758_vm1, %v2049_v2, 0.0 }
 0x54f   : > { %2112 = vadd.xlane.f32.xlu0 %v2111_v14 }
 0x551   : > { %v2145_v26 = vpop.permute.xlu1 %2144 }
 0x552   : > { %v2207_v16 = vsel %vm758_vm1, %v2145_v26, 0.0 }
 0x553   : > { %2208 = vadd.xlane.f32.xlu1 %v2207_v16  ;;  %v2001_v47 = vpop.xlane.xlu0 %2000 }
 0x554   : > { %v2478_v30 = vrot.slane %v2001_v47, %v4816_v44 }
 0x555   : > { %v2241_v11 = vpop.permute.xlu1 %2240 }
 0x556   : > { %v4823_v22 = vsel %vm2479_vm3, %v2478_v30, %v2473_v13  ;;  %v2303_v60 = vsel %vm758_vm1, %v2241_v11, 0.0  ;;  %vm2866_vm1 = vcmask 1040384  }
 0x557   : > { %2349 = vadd.xlane.f32.xlu1 %v2348_v49  ;;  %2304 = vadd.xlane.f32.xlu0 %v2303_v60  ;;  %v2068_v45 = vpop.xlane.xlu0 %2067 }
 0x558   : > { %v2501_v0 = vrot.slane %v2068_v45, %v4457_v27 }
 0x55b   : > { %v2164_v59 = vpop.xlane.xlu0 %2163  ;;  %2352 = vadd.xlane.f32.xlu0 %v2351_v48 }
 0x55c   : > { %v2597_v39 = vrot.slane %v2164_v59, %v4457_v27 }
 0x55f   : > { %v2263_v3 = vpop.xlane.xlu0 %2262 }
 0x560   : > { %v2697_v17 = vrot.slane %v2263_v3, %v4446_v61 }
 0x563   : > { %v2074_v43 = vpop.xlane.xlu0 %2073 }
 0x564   : > { %v2510_v34 = vrot.slane %v2074_v43, %v4450_v9 }
 0x567   : > { %v2170_v56 = vpop.xlane.xlu0 %2169 }
 0x568   : > { %v2606_v62 = vrot.slane %v2170_v56, %v4450_v9 }
 0x56b   : > { %v2077_v10 = vpop.xlane.xlu0 %2076 }
 0x56c   : > { %v2515_v23 = vrot.slane %v2077_v10, %v4460_v12 }
 0x56f   : > { %v2173_v41 = vpop.xlane.xlu0 %2172 }
 0x570   : > { %v2611_v13 = vrot.slane %v2173_v41, %v4460_v12 }
 0x573   : > { %v2269_v35 = vpop.xlane.xlu0 %2268 }
 0x577   : > { %v2272_v31 = vpop.xlane.xlu0 %2271 }
 0x57b   : > { %v4828_v63 = vpop.xlane.xlu0 %2082 }
 0x57f   : > { %v4830_v8 = vpop.xlane.xlu0 %2178 }
 0x583   : > { %v4832_v32 = vpop.xlane.xlu0 %2181 }
 0x586   : > { %v2260_v1 = vpop.xlane.xlu1 %2259 }
 0x587   : > { %v2693_v53 = vrot.slane %v2260_v1, %v4457_v27  ;;  %v4840_v37 = vpop.xlane.xlu0 %2277  ;;  %v2707_v27 = vrot.slane %v2269_v35, %v4460_v12 }
 0x589   : > { %v2698_v19 = vsel %vm2381_vm4, %v2697_v17, %v2693_v53 }
 0x58a   : > { %v2071_v24 = vpop.xlane.xlu1 %2070 }
 0x58b   : > { %v2505_v40 = vrot.slane %v2071_v24, %v4446_v61  ;;  %v2089_v57 = vpop.xlane.xlu0 %2088 }
 0x58d   : > { %v2506_v46 = vsel %vm2381_vm4, %v2505_v40, %v2501_v0  ;;  %v2525_v0 = vrot.slane %v4828_v63, %v4470_v42  ;;  %v2626_v63 = vrot.slane %v4832_v32, %v4486_v55  ;;  %v2722_v32 = vrot.slane %v4840_v37, %v4486_v55 }
 0x58e   : > { %v2511_v38 = vsel %vm2388_vm5, %v2510_v34, %v2506_v46  ;;  %v2167_v28 = vpop.xlane.xlu1 %2166  ;;  %v2621_v34 = vrot.slane %v4830_v8, %v4470_v42 }
 0x58f   : > { %v2601_v50 = vrot.slane %v2167_v28, %v4446_v61  ;;  %v2516_v36 = vsel %vm2395_vm6, %v2515_v23, %v2511_v38  ;;  %v2712_v61 = vrot.slane %v2272_v31, %v4476_v29  ;;  %v2188_v16 = vpop.xlane.xlu0 %2187 }
 0x591   : > { %v2602_v15 = vsel %vm2381_vm4, %v2601_v50, %v2597_v39  ;;  %vm2868_vm4 = vcmask 1041408  }
 0x592   : > { %v2607_v2 = vsel %vm2388_vm5, %v2606_v62, %v2602_v15  ;;  %v2266_v6 = vpop.xlane.xlu1 %2265 }
 0x593   : > { %v2702_v25 = vrot.slane %v2266_v6, %v4450_v9  ;;  %v2612_v14 = vsel %vm2395_vm6, %v2611_v13, %v2607_v2  ;;  %v4859_v30 = vpop.xlane.xlu0 %2283 }
 0x595   : > { %v2703_v26 = vsel %vm2388_vm5, %v2702_v25, %v2698_v19  ;;  %v5087_v25 = vld [vmem:[#allocation24_spill] sm:$0xff]  ;;  %vm2870_vm5 = vcmask 1042432  }
 0x596   : > { %v2708_v54 = vsel %vm2395_vm6, %v2707_v27, %v2703_v26  ;;  %v2080_v58 = vpop.xlane.xlu1 %2079  ;;  %vm2872_vm6 = vcmask 1043456  }
 0x597   : > { %v2713_v7 = vsel %vm2402_vm8, %v2712_v61, %v2708_v54  ;;  %v2095_v9 = vpop.xlane.xlu0 %2094  ;;  %v2520_v35 = vrot.slane %v2080_v58, %v4476_v29  ;;  %v2636_v58 = vrot.slane %v2188_v16, %v4565_v33 }
 0x599   : > { %v2521_v53 = vsel %vm2402_vm8, %v2520_v35, %v2516_v36  ;;  %v2535_v36 = vrot.slane %v2089_v57, %v4493_v21  ;;  %v5088_v57 = vld [vmem:[#allocation18_spill] sm:$0xff] }
 0x59a   : > { %v2176_v47 = vpop.xlane.xlu1 %2175  ;;  %v2526_v46 = vsel %vm2409_vm7, %v2525_v0, %v2521_v53  ;;  %v2545_v61 = vrot.slane %v2095_v9, %v5088_v57 }
 0x59b   : > { %v2194_v49 = vpop.xlane.xlu0 %2193  ;;  %v2616_v17 = vrot.slane %v2176_v47, %v4476_v29 }
 0x59d   : > { %v2617_v40 = vsel %vm2402_vm8, %v2616_v17, %v2612_v14 }
 0x59e   : > { %v2275_v11 = vpop.xlane.xlu1 %2274  ;;  %v2622_v38 = vsel %vm2409_vm7, %v2621_v34, %v2617_v40 }
 0x59f   : > { %v4861_v48 = vpop.xlane.xlu0 %2289  ;;  %v2717_v29 = vrot.slane %v2275_v11, %v4470_v42  ;;  %v2627_v8 = vsel %vm2416_vm10, %v2626_v63, %v2622_v38 }
 0x5a1   : > { %v2718_v15 = vsel %vm2409_vm7, %v2717_v29, %v2713_v7 }
 0x5a2   : > { %v2086_v20 = vpop.xlane.xlu1 %2085  ;;  %v2723_v7 = vsel %vm2416_vm10, %v2722_v32, %v2718_v15 }
 0x5a3   : > { %v2101_v3 = vpop.xlane.xlu0 %2100  ;;  %v2530_v19 = vrot.slane %v2086_v20, %v4486_v55 }
 0x5a4   : > { %v2555_v9 = vrot.slane %v2101_v3, %v4661_v5 }
 0x5a5   : > { %v2531_v28 = vsel %vm2416_vm10, %v2530_v19, %v2526_v46 }
 0x5a6   : > { %v2185_v60 = vpop.xlane.xlu1 %2184  ;;  %v2536_v13 = vsel %vm2423_vm9, %v2535_v36, %v2531_v28 }
 0x5a7   : > { %v4863_v10 = vpop.xlane.xlu0 %2199  ;;  %v2631_v62 = vrot.slane %v2185_v60, %v4493_v21 }
 0x5a8   : > { %v2656_v0 = vrot.slane %v4863_v10, %v4712_v52 }
 0x5a9   : > { %v2632_v26 = vsel %vm2423_vm9, %v2631_v62, %v2627_v8 }
 0x5aa   : > { %v2281_v45 = vpop.xlane.xlu1 %2280  ;;  %v2637_v20 = vsel %vm2430_vm11, %v2636_v58, %v2632_v26 }
 0x5ab   : > { %v4866_v31 = vpop.xlane.xlu0 %2295  ;;  %v2727_v42 = vrot.slane %v2281_v45, %v4493_v21  ;;  %v2732_v21 = vrot.slane %v4859_v30, %v4565_v33  ;;  %v2646_v45 = vrot.slane %v2194_v49, %v5087_v25 }
 0x5ac   : > { %v2752_v28 = vrot.slane %v4866_v31, %v4712_v52 }
 0x5ad   : > { %v2728_v11 = vsel %vm2423_vm9, %v2727_v42, %v2723_v7 }
 0x5ae   : > { %v2092_v12 = vpop.xlane.xlu1 %2091 }
 0x5af   : > { %v2107_v23 = vpop.xlane.xlu0 %2106  ;;  %v2540_v39 = vrot.slane %v2092_v12, %v4565_v33 }
 0x5b0   : > { %v2565_v35 = vrot.slane %v2107_v23, %v4761_v4 }
 0x5b1   : > { %v2541_v2 = vsel %vm2430_vm11, %v2540_v39, %v2536_v13 }
 0x5b2   : > { %v2191_v59 = vpop.xlane.xlu1 %2190  ;;  %v2546_v47 = vsel %vm2437_vm12, %v2545_v61, %v2541_v2 }
 0x5b3   : > { %v2206_v6 = vpop.xlane.xlu0 %2205  ;;  %v2641_v54 = vrot.slane %v2191_v59, %v5088_v57  ;;  %v2733_v59 = vsel %vm2430_vm11, %v2732_v21, %v2728_v11 }
 0x5b4   : > { %v2666_v39 = vrot.slane %v2206_v6, %v4802_v51 }
 0x5b5   : > { %v2642_v60 = vsel %vm2437_vm12, %v2641_v54, %v2637_v20 }
 0x5b6   : > { %v2287_v43 = vpop.xlane.xlu1 %2286  ;;  %v2647_v17 = vsel %vm2444_vm13, %v2646_v45, %v2642_v60 }
 0x5b7   : > { %v2737_v16 = vrot.slane %v2287_v43, %v5088_v57  ;;  %v2302_v12 = vpop.xlane.xlu0 %2301 }
 0x5b8   : > { %v2762_v15 = vrot.slane %v2302_v12, %v4802_v51 }
 0x5b9   : > { %v2738_v43 = vsel %vm2437_vm12, %v2737_v16, %v2733_v59 }
 0x5ba   : > { %v2098_v56 = vpop.xlane.xlu1 %2097 }
 0x5bb   : > { %v2550_v14 = vrot.slane %v2098_v56, %v5087_v25 }
 0x5bd   : > { %v2551_v55 = vsel %vm2444_vm13, %v2550_v14, %v2546_v47 }
 0x5be   : > { %v2197_v41 = vpop.xlane.xlu1 %2196  ;;  %v2556_v56 = vsel %vm2451_vm14, %v2555_v9, %v2551_v55 }
 0x5bf   : > { %v2651_v33 = vrot.slane %v2197_v41, %v4661_v5 }
 0x5c1   : > { %v2652_v41 = vsel %vm2451_vm14, %v2651_v33, %v2647_v17 }
 0x5c2   : > { %v4868_v1 = vpop.xlane.xlu1 %2292  ;;  %v2657_v38 = vsel %vm2458_vm15, %v2656_v0, %v2652_v41 }
 0x5c3   : > { %v2747_v49 = vrot.slane %v4868_v1, %v4661_v5 }
 0x5c6   : > { %v2104_v24 = vpop.xlane.xlu1 %2103 }
 0x5c7   : > { %v2560_v37 = vrot.slane %v2104_v24, %v4712_v52  ;;  %v2742_v24 = vrot.slane %v4861_v48, %v5087_v25 }
 0x5c9   : > { %v2561_v3 = vsel %vm2458_vm15, %v2560_v37, %v2556_v56  ;;  %v2743_v46 = vsel %vm2444_vm13, %v2742_v24, %v2738_v43 }
 0x5ca   : > { %v2203_v50 = vpop.xlane.xlu1 %2202  ;;  %v2566_v34 = vsel %vm2465_vm0, %v2565_v35, %v2561_v3  ;;  %v2748_v1 = vsel %vm2451_vm14, %v2747_v49, %v2743_v46 }
 0x5cb   : > { %v2661_v19 = vrot.slane %v2203_v50, %v4761_v4  ;;  %v2753_v62 = vsel %vm2458_vm15, %v2752_v28, %v2748_v1 }
 0x5cd   : > { %v2662_v29 = vsel %vm2465_vm0, %v2661_v19, %v2657_v38 }
 0x5ce   : > { %v2299_v27 = vpop.xlane.xlu1 %2298  ;;  %v2667_v8 = vsel %vm2472_vm2, %v2666_v39, %v2662_v29 }
 0x5cf   : > { %v2757_v48 = vrot.slane %v2299_v27, %v4761_v4 }
 0x5d1   : > { %v2758_v13 = vsel %vm2465_vm0, %v2757_v48, %v2753_v62 }
 0x5d2   : > { %v2110_v30 = vpop.xlane.xlu1 %2109  ;;  %v2763_v6 = vsel %vm2472_vm2, %v2762_v15, %v2758_v13 }
 0x5d3   : > { %v2570_v53 = vrot.slane %v2110_v30, %v4802_v51 }
 0x5d5   : > { %v2571_v5 = vsel %vm2472_vm2, %v2570_v53, %v2566_v34 }
 0x5d8   : > { %v2113_v40 = vpop.xlane.xlu0 %2112 }
 0x5d9   : > { %v2575_v23 = vrot.slane %v2113_v40, %v4816_v44 }
 0x5db   : > { %v2576_v10 = vsel %vm2479_vm3, %v2575_v23, %v2571_v5 }
 0x5dc   : > { %v2867_v50 = vsel %vm2866_vm1, %v4823_v22, %v2576_v10  ;;  %v2209_v63 = vpop.xlane.xlu1 %2208 }
 0x5dd   : > { %v2671_v36 = vrot.slane %v2209_v63, %v4816_v44 }
 0x5df   : > { %v2672_v4 = vsel %vm2479_vm3, %v2671_v36, %v2667_v8 }
 0x5e0   : > { %v2869_v42 = vsel %vm2868_vm4, %v2867_v50, %v2672_v4  ;;  %v2350_v52 = vpop.xlane.xlu1 %2349  ;;  %v2305_v31 = vpop.xlane.xlu0 %2304 }
 0x5e1   : > { %v2767_v22 = vrot.slane %v2305_v31, %v4816_v44  ;;  %v2858_v2 = vrot.slane %v2350_v52, %v4802_v51 }
 0x5e3   : > { %v2768_v25 = vsel %vm2479_vm3, %v2767_v22, %v2763_v6  ;;  %v2859_v57 = vsel %vm2472_vm2, %v2858_v2, %v4807_v18 }
 0x5e4   : > { %v2871_v14 = vsel %vm2870_vm5, %v2869_v42, %v2768_v25  ;;  %v2353_v27 = vpop.xlane.xlu0 %2352 }
 0x5e5   : > { %v2863_v32 = vrot.slane %v2353_v27, %v4816_v44 }
 0x5e7   : > { %v2864_v61 = vsel %vm2479_vm3, %v2863_v32, %v2859_v57 }
 0x5e8   : > { %v2873_v26 = vsel %vm2872_vm6, %v2871_v14, %v2864_v61 }
 0x5e9   : > { %3287 = vrsqrt.f32 %v2873_v26  ;;  %vm2876_vm7 = vcmp.eq.f32.partialorder %v2873_v26, inf  ;;  %v2879_v58 = vand.u32 2147483648, %v2873_v26  ;;  %vm2878_vm8 = vcmp.eq.f32.partialorder %v2873_v26, 0.0 }
 0x5f6   : > { %v3288_v54 = vpop.eup %3287 }
 0x5f7   : > { %v2875_v51 = vmul.f32 %v3288_v54, %v2873_v26 }
 0x5f9   : > { %v2877_v21 = vsel %vm2876_vm7, %v2873_v26, %v2875_v51 }
 0x5fa   : > { %v2880_v18 = vsel %vm2878_vm8, %v2879_v58, %v2877_v21 }
 0x5fb   : > { %2881 = vst [vmem:[%s331_s21] sm:$0x1f] %v2880_v18 }
 0x5fc   : > { %3316 = shalt.err (!%p3313_p3)
}
 0x5fd   : > { %s3317_s20 = scalar_lea.hbm %s4959_s25, 128  ;;  %s3321_s13 = scalar_lea.hbm %s5002_s8, 256 }
 0x5fe   : > { %p3318_p4 = scmp.ne.s32.totalorder %s4959_s25, %s3317_s20  ;;  %p3322_p9 = scmp.lt.s32.totalorder %s4959_s25, %s5002_s8 }
 0x5ff   : > { %p3323_p10 = scmp.lt.s32.totalorder %s3321_s13, %s3317_s20 }
 0x600   : > { %p3319_p7 = pnand %p3318_p4, %p3453_p5 }
 0x601   : > { %p3324_p11 = por %p3323_p10, %p3322_p9 }
 0x602   : > { %p3320_p8 = pneg %p3319_p7 }
 0x604   : > { %p3325_p12 = pnand %p3324_p11, %p3320_p8 }
 0x606   : > { %3328 = shalt.err (!%p3325_p12)
}
 0x607   : > { %3156 = dma.vmem_to_hbm [thread:$0]  (%p3453_p5), %s2897_s12, 128, %s4959_s25, %s2883_s19  }
 0x608 PF: > { %p3162_p13 = scmp.ge.s32.totalorder %s3363_s30, 2  ;;  %s2908_s24 = sand.u32 1, %s3351_s27  }
 0x609   : > { %s2909_s10 = scalar_lea.sflag [#allocation3], %s2908_s24 }
 0x60a   : > { %p3159_p0 = pnand %p3162_p13, %p3457_p6 }
 0x60c   : > { %p3160_p1 = pneg %p3159_p0 }
 0x60e   : > { %3346 = dma.done.wait (%p3160_p1), %s2909_s10, 128  }
 0x60f   : > { %3348 = vsyncadd (%p3160_p1), %s2909_s10, 4294967168  ;;  %p18_p2 = scmp.ge.s32.totalorder %s3440_s11, 4   ;;  %s5089_s27 = smov %s3355_s28 }
 0x610   : > { %s5090_s28 = smov %s3359_s29  ;;  %s5091_s29 = smov %s3451_s14 }
 0x611   : > { %s5092_s30 = smov %s3440_s11  ;;  %20 = sbr.rel (!%p18_p2) target bundleno = 3 (0x3), region = 93 }
 0x616   :  { %2914 = vsyncpa [#allocation3], 1 }
 0x617   :  { %2916 = vsyncpa [#allocation3 + $0x1], 1 }

</bundles_post_ra>
